<compile_context>
chip_gen: v5e
topology: v5e:2x2
jax: 0.10.0
libtpu: 0.0.40
codegen_flags: <defaults>
</compile_context>

<pallas_src>
import jax
import jax.numpy as jnp
import numpy as np
from jax.experimental import pallas as pl
from jax.experimental.pallas import tpu as pltpu

LN_EPS = 1e-5


# ----------------------------- kernel helpers -----------------------------

def _layernorm(x, w, b, eps=LN_EPS):
    # x: (S, D) f32, w/b: (1, D) f32 -> broadcast over rows
    mu = jnp.mean(x, axis=-1, keepdims=True)
    xc = x - mu
    var = jnp.mean(xc * xc, axis=-1, keepdims=True)
    return xc * jax.lax.rsqrt(var + eps) * w + b


def _gelu_exact(x):
    return 0.5 * x * (1.0 + jax.lax.erf(x * 0.7071067811865476))


# ------------------------------ fused kernel -------------------------------

def make_transformer_kernel(num_heads, tq):
    H = num_heads

    def _mha(q_src, kv_src, wq, wk, wv, wo, bo):
        # q_src: (n, Dq) f32, kv_src: (m, Dc) f32
        # wq: (Dq, H*d) bf16 (1/sqrt(d) folded), wk/wv: (Dc, H*d) bf16
        # wo: (H*d, Dq) bf16, bo: (1, Dq) f32
        hd = wq.shape[1]
        d = hd // H
        # Lane-dense projections: one matmul each, full MXU output width H*d.
        q = jnp.dot(q_src.astype(jnp.bfloat16), wq, preferred_element_type=jnp.float32)
        k = jnp.dot(kv_src.astype(jnp.bfloat16), wk, preferred_element_type=jnp.float32)
        v = jnp.dot(kv_src.astype(jnp.bfloat16), wv, preferred_element_type=jnp.float32)
        # Head split only for the attention core (static lane slices, leading-axis stack).
        split = lambda t: jnp.stack([t[:, h * d:(h + 1) * d] for h in range(H)], axis=0)
        qh = split(q).astype(jnp.bfloat16)          # (H, n, d)
        kh = split(k).astype(jnp.bfloat16)          # (H, m, d)
        vh = split(v).astype(jnp.bfloat16)          # (H, m, d)
        sim = jnp.einsum('hnd,hmd->hnm', qh, kh, preferred_element_type=jnp.float32)
        sim = sim - jnp.max(sim, axis=-1, keepdims=True)
        e = jnp.exp(sim)                            # f32 softmax
        p = e * pl.reciprocal(jnp.sum(e, axis=-1, keepdims=True), approx=True)
        o = jnp.einsum('hnm,hmd->hnd', p.astype(jnp.bfloat16), vh,
                       preferred_element_type=jnp.float32)            # (H, n, d)
        # Head merge: lane concat -> ONE output matmul with full contraction depth H*d.
        merged = jnp.concatenate([o[h] for h in range(H)], axis=-1)   # (n, H*d)
        out = jnp.dot(merged.astype(jnp.bfloat16), wo, preferred_element_type=jnp.float32)
        return out + bo

    def kernel(x_ref, c_ref,
               # self-attention (layer_normc unused: cond is None in the torch forward)
               s_lnx_w, s_lnx_b, s_wq, s_wk, s_wv, s_wo, s_bo, s_lnf_w, s_lnf_b,
               # cross-attention
               c_lnx_w, c_lnx_b, c_lnc_w, c_lnc_b,
               c_wq, c_wk, c_wv, c_wo, c_bo, c_lnf_w, c_lnf_b,
               # feed-forward
               f_ln_w, f_ln_b, f_w1, f_b1, f_w2, f_b2,
               out_ref):
        row0 = pl.multiple_of(pl.program_id(1) * tq, tq)
        x_full = x_ref[0].astype(jnp.float32)                         # (N, Dq)
        x_tile = x_ref[0, pl.ds(row0, tq), :].astype(jnp.float32)     # (tq, Dq)
        c = c_ref[0].astype(jnp.float32)                              # (M, Dc)

        # ---- stage 1: self-attention (K/V come from layer_normx of the FULL x) ----
        xn_full = _layernorm(x_full, s_lnx_w[...], s_lnx_b[...])
        xn_tile = _layernorm(x_tile, s_lnx_w[...], s_lnx_b[...])
        a = _mha(xn_tile, xn_full, s_wq[...], s_wk[...], s_wv[...], s_wo[...], s_bo[...])
        h1 = _layernorm(a + x_tile, s_lnf_w[...], s_lnf_b[...]) + x_tile

        # ---- stage 2: cross-attention with cond ----
        xn = _layernorm(h1, c_lnx_w[...], c_lnx_b[...])
        cn = _layernorm(c, c_lnc_w[...], c_lnc_b[...])
        a = _mha(xn, cn, c_wq[...], c_wk[...], c_wv[...], c_wo[...], c_bo[...])
        h2 = _layernorm(a + h1, c_lnf_w[...], c_lnf_b[...]) + h1

        # ---- stage 3: feed-forward (exact-erf GELU, matches nn.GELU()) ----
        xn = _layernorm(h2, f_ln_w[...], f_ln_b[...])
        hh = _gelu_exact(jnp.dot(xn.astype(jnp.bfloat16), f_w1[...],
                                 preferred_element_type=jnp.float32) + f_b1[...])
        y = jnp.dot(hh.astype(jnp.bfloat16), f_w2[...],
                    preferred_element_type=jnp.float32) + f_b2[...]
        out_ref[0] = (y + h2).astype(out_ref.dtype)

    return kernel


# ------------------------------ wrapper / packing ---------------------------

def pack_params(params, heads):
    """Host-side, once: fold the attention scale into Wq and cast MXU weights to bf16.
    LayerNorm params and biases stay f32 (they feed VPU/EUP work only)."""
    s, xp, f = params["sattn"], params["xattn"], params["ff"]
    d = s["wq"].shape[1] // heads
    scale = jnp.float32(d) ** -0.5
    bf = lambda w: w.astype(jnp.bfloat16)
    return (
        # self-attention
        s["lnx_w"], s["lnx_b"],
        bf(s["wq"] * scale), bf(s["wk"]), bf(s["wv"]), bf(s["wo"]),
        s["bo"], s["lnf_w"], s["lnf_b"],
        # cross-attention
        xp["lnx_w"], xp["lnx_b"], xp["lnc_w"], xp["lnc_b"],
        bf(xp["wq"] * scale), bf(xp["wk"]), bf(xp["wv"]), bf(xp["wo"]),
        xp["bo"], xp["lnf_w"], xp["lnf_b"],
        # feed-forward
        f["ln_w"], f["ln_b"], bf(f["w1"]), f["b1"], bf(f["w2"]), f["b2"],
    )


def transformer_forward(x, cond, packed, num_heads, tq=None):
    B, N, Dq = x.shape
    _, M, Dc = cond.shape
    if tq is None:
        tq = N if N <= 128 else 128
    assert N % tq == 0, "query tile must divide the sequence length"

    def full(a):
        nz = (0,) * a.ndim
        return pl.BlockSpec(a.shape, lambda b, i, _nz=nz: _nz)

    in_specs = ([pl.BlockSpec((1, N, Dq), lambda b, i: (b, 0, 0)),
                 pl.BlockSpec((1, M, Dc), lambda b, i: (b, 0, 0))]
                + [full(w) for w in packed])
    out_spec = pl.BlockSpec((1, tq, Dq), lambda b, i: (b, i, 0))

    return pl.pallas_call(
        make_transformer_kernel(num_heads, tq),
        out_shape=jax.ShapeDtypeStruct((B, N, Dq), x.dtype),
        grid=(B, N // tq),
        in_specs=in_specs,
        out_specs=out_spec,
        compiler_params=pltpu.CompilerParams(
            dimension_semantics=("parallel", "parallel"),
            vmem_limit_bytes=64 * 1024 * 1024,   # cap also fits v7x's 64 MiB VMEM
        ),
    )(x, cond, *packed)


# --------------------------------- params ----------------------------------

def init_cross_attn_params(key, query_dim, cond_dim, inner_dim, self_attn,
                           dtype=jnp.float32):
    ks = jax.random.split(key, 9)
    s = 0.02
    p = {
        "lnx_w": (1.0 + 0.05 * jax.random.normal(ks[5], (1, query_dim))).astype(dtype),
        "lnx_b": (0.05 * jax.random.normal(ks[6], (1, query_dim))).astype(dtype),
        # stored pre-transposed: (in_features, out_features)
        "wq": (s * jax.random.normal(ks[0], (query_dim, inner_dim))).astype(dtype),
        "wk": (s * jax.random.normal(ks[1], (cond_dim, inner_dim))).astype(dtype),
        "wv": (s * jax.random.normal(ks[2], (cond_dim, inner_dim))).astype(dtype),
        "wo": (s * jax.random.normal(ks[3], (inner_dim, query_dim))).astype(dtype),
        "bo": (s * jax.random.normal(ks[4], (1, query_dim))).astype(dtype),
        "lnf_w": (1.0 + 0.05 * jax.random.normal(ks[7], (1, query_dim))).astype(dtype),
        "lnf_b": (0.05 * jax.random.normal(ks[8], (1, query_dim))).astype(dtype),
    }
    if not self_attn:  # layer_normc is only used when an external cond is given
        kc1, kc2 = jax.random.split(ks[5])
        p["lnc_w"] = (1.0 + 0.05 * jax.random.normal(kc1, (1, cond_dim))).astype(dtype)
        p["lnc_b"] = (0.05 * jax.random.normal(kc2, (1, cond_dim))).astype(dtype)
    return p


def init_transformer_params(key, query_dim, attn_heads, attn_dims, cond_dim,
                            dtype=jnp.float32):
    inner = attn_heads * attn_dims
    k1, k2, k3, k4, k5, k6, k7, k8 = jax.random.split(key, 8)
    s = 0.02
    return {
        "sattn": init_cross_attn_params(k1, query_dim, query_dim, inner, True, dtype),
        "xattn": init_cross_attn_params(k2, query_dim, cond_dim, inner, False, dtype),
        "ff": {
            "ln_w": (1.0 + 0.05 * jax.random.normal(k7, (1, query_dim))).astype(dtype),
            "ln_b": (0.05 * jax.random.normal(k8, (1, query_dim))).astype(dtype),
            "w1": (s * jax.random.normal(k3, (query_dim, inner))).astype(dtype),
            "b1": (s * jax.random.normal(k4, (1, inner))).astype(dtype),
            "w2": (s * jax.random.normal(k5, (inner, query_dim))).astype(dtype),
            "b2": (s * jax.random.normal(k6, (1, query_dim))).astype(dtype),
        },
    }


# ------------------------------ pure-JAX reference -------------------------

def _ref_ln(x, w, b, eps=LN_EPS):
    mu = jnp.mean(x, axis=-1, keepdims=True)
    var = jnp.mean((x - mu) ** 2, axis=-1, keepdims=True)
    return (x - mu) / jnp.sqrt(var + eps) * w + b


def _ref_cross_attn(x, cond, p, heads, self_attn):
    xn = _ref_ln(x, p["lnx_w"][0], p["lnx_b"][0])
    cn = xn if self_attn else _ref_ln(cond, p["lnc_w"][0], p["lnc_b"][0])
    q, k, v = xn @ p["wq"], cn @ p["wk"], cn @ p["wv"]
    B, N, inner = q.shape
    d = inner // heads
    split = lambda t: t.reshape(B, -1, heads, d).transpose(0, 2, 1, 3)
    qh, kh, vh = split(q), split(k), split(v)
    sim = jnp.einsum("bhid,bhjd->bhij", qh, kh) * (d ** -0.5)
    attn = jax.nn.softmax(sim, axis=-1)
    o = jnp.einsum("bhij,bhjd->bhid", attn, vh).transpose(0, 2, 1, 3).reshape(B, N, inner)
    o = o @ p["wo"] + p["bo"][0]
    o = _ref_ln(o + x, p["lnf_w"][0], p["lnf_b"][0])
    return o + x


def _ref_transformer(x, cond, params, heads):
    x = _ref_cross_attn(x, None, params["sattn"], heads, self_attn=True)
    x = _ref_cross_attn(x, cond, params["xattn"], heads, self_attn=False)
    p = params["ff"]
    xn = _ref_ln(x, p["ln_w"][0], p["ln_b"][0])
    h = jax.nn.gelu(xn @ p["w1"] + p["b1"][0], approximate=False)
    return h @ p["w2"] + p["b2"][0] + x


# ----------------------------------- main ----------------------------------

if __name__ == "__main__":
    # TODO(synk): dropout / gradient checkpointing are training-time only; this is the
    #             eval-mode forward pass.
    B, N, M = 2, 16, 8
    query_dim, cond_dim = 32, 16
    attn_heads, attn_dims = 4, 8

    key = jax.random.PRNGKey(0)
    kx, kc, kp = jax.random.split(key, 3)
    x = jax.random.normal(kx, (B, N, query_dim), jnp.float32)
    cond = jax.random.normal(kc, (B, M, cond_dim), jnp.float32)
    params = init_transformer_params(kp, query_dim, attn_heads, attn_dims, cond_dim)

    packed = pack_params(params, attn_heads)            # host-side, once
    out = transformer_forward(x, cond, packed, attn_heads, tq=8)   # 2 query tiles / batch
    out = jax.block_until_ready(out)

    ref = _ref_transformer(x, cond, params, attn_heads)
    assert out.shape == (B, N, query_dim)
    # tolerance accounts for bf16 MXU operands + the EUP approximate-reciprocal softmax
    np.testing.assert_allclose(np.asarray(out), np.asarray(ref), rtol=2e-2, atol=2e-2)

    print("KERNEL_OK")
</pallas_src>

<mosaic_0001>
module attributes {stable_mosaic.version = 11 : i64} {
  func.func @kernel(%arg0: i32, %arg1: i32, %arg2: memref<1x16x32xf32, #tpu.memory_space<vmem>>, %arg3: memref<1x8x16xf32, #tpu.memory_space<vmem>>, %arg4: memref<1x32xf32, #tpu.memory_space<vmem>>, %arg5: memref<1x32xf32, #tpu.memory_space<vmem>>, %arg6: memref<32x32xbf16, #tpu.memory_space<vmem>>, %arg7: memref<32x32xbf16, #tpu.memory_space<vmem>>, %arg8: memref<32x32xbf16, #tpu.memory_space<vmem>>, %arg9: memref<32x32xbf16, #tpu.memory_space<vmem>>, %arg10: memref<1x32xf32, #tpu.memory_space<vmem>>, %arg11: memref<1x32xf32, #tpu.memory_space<vmem>>, %arg12: memref<1x32xf32, #tpu.memory_space<vmem>>, %arg13: memref<1x32xf32, #tpu.memory_space<vmem>>, %arg14: memref<1x32xf32, #tpu.memory_space<vmem>>, %arg15: memref<1x16xf32, #tpu.memory_space<vmem>>, %arg16: memref<1x16xf32, #tpu.memory_space<vmem>>, %arg17: memref<32x32xbf16, #tpu.memory_space<vmem>>, %arg18: memref<16x32xbf16, #tpu.memory_space<vmem>>, %arg19: memref<16x32xbf16, #tpu.memory_space<vmem>>, %arg20: memref<32x32xbf16, #tpu.memory_space<vmem>>, %arg21: memref<1x32xf32, #tpu.memory_space<vmem>>, %arg22: memref<1x32xf32, #tpu.memory_space<vmem>>, %arg23: memref<1x32xf32, #tpu.memory_space<vmem>>, %arg24: memref<1x32xf32, #tpu.memory_space<vmem>>, %arg25: memref<1x32xf32, #tpu.memory_space<vmem>>, %arg26: memref<32x32xbf16, #tpu.memory_space<vmem>>, %arg27: memref<1x32xf32, #tpu.memory_space<vmem>>, %arg28: memref<32x32xbf16, #tpu.memory_space<vmem>>, %arg29: memref<1x32xf32, #tpu.memory_space<vmem>>, %arg30: memref<1x8x32xf32, #tpu.memory_space<vmem>>) attributes {dimension_semantics = [#tpu.dimension_semantics<parallel>, #tpu.dimension_semantics<parallel>], iteration_bounds = array<i64: 2, 2>, scalar_prefetch = 0 : i64, scratch_operands = 0 : i64, tpu.core_type = #tpu.core_type<tc>, window_params = [{transform_indices = @transform_0, window_bounds = array<i64: 1, 16, 32>}, {transform_indices = @transform_1, window_bounds = array<i64: 1, 8, 16>}, {pipeline_mode = #tpu.pipeline_mode<synchronous>, transform_indices = @transform_2, window_bounds = array<i64: 1, 32>}, {pipeline_mode = #tpu.pipeline_mode<synchronous>, transform_indices = @transform_3, window_bounds = array<i64: 1, 32>}, {pipeline_mode = #tpu.pipeline_mode<synchronous>, transform_indices = @transform_4, window_bounds = array<i64: 32, 32>}, {pipeline_mode = #tpu.pipeline_mode<synchronous>, transform_indices = @transform_5, window_bounds = array<i64: 32, 32>}, {pipeline_mode = #tpu.pipeline_mode<synchronous>, transform_indices = @transform_6, window_bounds = array<i64: 32, 32>}, {pipeline_mode = #tpu.pipeline_mode<synchronous>, transform_indices = @transform_7, window_bounds = array<i64: 32, 32>}, {pipeline_mode = #tpu.pipeline_mode<synchronous>, transform_indices = @transform_8, window_bounds = array<i64: 1, 32>}, {pipeline_mode = #tpu.pipeline_mode<synchronous>, transform_indices = @transform_9, window_bounds = array<i64: 1, 32>}, {pipeline_mode = #tpu.pipeline_mode<synchronous>, transform_indices = @transform_10, window_bounds = array<i64: 1, 32>}, {pipeline_mode = #tpu.pipeline_mode<synchronous>, transform_indices = @transform_11, window_bounds = array<i64: 1, 32>}, {pipeline_mode = #tpu.pipeline_mode<synchronous>, transform_indices = @transform_12, window_bounds = array<i64: 1, 32>}, {pipeline_mode = #tpu.pipeline_mode<synchronous>, transform_indices = @transform_13, window_bounds = array<i64: 1, 16>}, {pipeline_mode = #tpu.pipeline_mode<synchronous>, transform_indices = @transform_14, window_bounds = array<i64: 1, 16>}, {pipeline_mode = #tpu.pipeline_mode<synchronous>, transform_indices = @transform_15, window_bounds = array<i64: 32, 32>}, {pipeline_mode = #tpu.pipeline_mode<synchronous>, transform_indices = @transform_16, window_bounds = array<i64: 16, 32>}, {pipeline_mode = #tpu.pipeline_mode<synchronous>, transform_indices = @transform_17, window_bounds = array<i64: 16, 32>}, {pipeline_mode = #tpu.pipeline_mode<synchronous>, transform_indices = @transform_18, window_bounds = array<i64: 32, 32>}, {pipeline_mode = #tpu.pipeline_mode<synchronous>, transform_indices = @transform_19, window_bounds = array<i64: 1, 32>}, {pipeline_mode = #tpu.pipeline_mode<synchronous>, transform_indices = @transform_20, window_bounds = array<i64: 1, 32>}, {pipeline_mode = #tpu.pipeline_mode<synchronous>, transform_indices = @transform_21, window_bounds = array<i64: 1, 32>}, {pipeline_mode = #tpu.pipeline_mode<synchronous>, transform_indices = @transform_22, window_bounds = array<i64: 1, 32>}, {pipeline_mode = #tpu.pipeline_mode<synchronous>, transform_indices = @transform_23, window_bounds = array<i64: 1, 32>}, {pipeline_mode = #tpu.pipeline_mode<synchronous>, transform_indices = @transform_24, window_bounds = array<i64: 32, 32>}, {pipeline_mode = #tpu.pipeline_mode<synchronous>, transform_indices = @transform_25, window_bounds = array<i64: 1, 32>}, {pipeline_mode = #tpu.pipeline_mode<synchronous>, transform_indices = @transform_26, window_bounds = array<i64: 32, 32>}, {pipeline_mode = #tpu.pipeline_mode<synchronous>, transform_indices = @transform_27, window_bounds = array<i64: 1, 32>}, {transform_indices = @transform_28, window_bounds = array<i64: 1, 8, 32>}]} {
    %c8_i32 = arith.constant 8 : i32
    %0 = arith.muli %arg1, %c8_i32 : i32
    %1 = tpu.assume_multiple %0, 8 : i32
    %c0 = arith.constant 0 : index
    %c0_0 = arith.constant 0 : index
    %c0_1 = arith.constant 0 : index
    %2 = vector.load %arg2[%c0, %c0_0, %c0_1] : memref<1x16x32xf32, #tpu.memory_space<vmem>>, vector<1x16x32xf32>
    %3 = vector.shape_cast %2 : vector<1x16x32xf32> to vector<16x32xf32>
    %c0_2 = arith.constant 0 : index
    %4 = arith.index_cast %1 : i32 to index
    %c0_3 = arith.constant 0 : index
    %5 = vector.load %arg2[%c0_2, %4, %c0_3] : memref<1x16x32xf32, #tpu.memory_space<vmem>>, vector<1x8x32xf32>
    %6 = vector.shape_cast %5 : vector<1x8x32xf32> to vector<8x32xf32>
    %c0_4 = arith.constant 0 : index
    %c0_5 = arith.constant 0 : index
    %c0_6 = arith.constant 0 : index
    %7 = vector.load %arg3[%c0_4, %c0_5, %c0_6] : memref<1x8x16xf32, #tpu.memory_space<vmem>>, vector<1x8x16xf32>
    %8 = vector.shape_cast %7 : vector<1x8x16xf32> to vector<8x16xf32>
    %c0_7 = arith.constant 0 : index
    %c0_8 = arith.constant 0 : index
    %9 = vector.load %arg4[%c0_7, %c0_8] : memref<1x32xf32, #tpu.memory_space<vmem>>, vector<1x32xf32>
    %c0_9 = arith.constant 0 : index
    %c0_10 = arith.constant 0 : index
    %10 = vector.load %arg5[%c0_9, %c0_10] : memref<1x32xf32, #tpu.memory_space<vmem>>, vector<1x32xf32>
    %cst = arith.constant dense<0.000000e+00> : vector<16xf32>
    %11 = vector.multi_reduction <add>, %3, %cst [1] : vector<16x32xf32> to vector<16xf32>
    %12 = vector.shape_cast %11 : vector<16xf32> to vector<16x1xf32>
    %cst_11 = arith.constant 3.200000e+01 : f32
    %13 = vector.broadcast %cst_11 : f32 to vector<16x1xf32>
    %14 = arith.divf %12, %13 : vector<16x1xf32>
    %15 = vector.broadcast %14 : vector<16x1xf32> to vector<16x32xf32>
    %16 = arith.subf %3, %15 : vector<16x32xf32>
    %17 = arith.mulf %16, %16 : vector<16x32xf32>
    %cst_12 = arith.constant dense<0.000000e+00> : vector<16xf32>
    %18 = vector.multi_reduction <add>, %17, %cst_12 [1] : vector<16x32xf32> to vector<16xf32>
    %19 = vector.shape_cast %18 : vector<16xf32> to vector<16x1xf32>
    %cst_13 = arith.constant 3.200000e+01 : f32
    %20 = vector.broadcast %cst_13 : f32 to vector<16x1xf32>
    %21 = arith.divf %19, %20 : vector<16x1xf32>
    %cst_14 = arith.constant 9.99999974E-6 : f32
    %22 = vector.broadcast %cst_14 : f32 to vector<16x1xf32>
    %23 = arith.addf %21, %22 : vector<16x1xf32>
    %24 = math.rsqrt %23 : vector<16x1xf32>
    %25 = vector.broadcast %24 : vector<16x1xf32> to vector<16x32xf32>
    %26 = arith.mulf %16, %25 : vector<16x32xf32>
    %27 = vector.broadcast %9 : vector<1x32xf32> to vector<16x32xf32>
    %28 = arith.mulf %26, %27 : vector<16x32xf32>
    %29 = vector.broadcast %10 : vector<1x32xf32> to vector<16x32xf32>
    %30 = arith.addf %28, %29 : vector<16x32xf32>
    %c0_15 = arith.constant 0 : index
    %c0_16 = arith.constant 0 : index
    %31 = vector.load %arg4[%c0_15, %c0_16] : memref<1x32xf32, #tpu.memory_space<vmem>>, vector<1x32xf32>
    %c0_17 = arith.constant 0 : index
    %c0_18 = arith.constant 0 : index
    %32 = vector.load %arg5[%c0_17, %c0_18] : memref<1x32xf32, #tpu.memory_space<vmem>>, vector<1x32xf32>
    %cst_19 = arith.constant dense<0.000000e+00> : vector<8xf32>
    %33 = vector.multi_reduction <add>, %6, %cst_19 [1] : vector<8x32xf32> to vector<8xf32>
    %34 = vector.shape_cast %33 : vector<8xf32> to vector<8x1xf32>
    %cst_20 = arith.constant 3.200000e+01 : f32
    %35 = vector.broadcast %cst_20 : f32 to vector<8x1xf32>
    %36 = arith.divf %34, %35 : vector<8x1xf32>
    %37 = vector.broadcast %36 : vector<8x1xf32> to vector<8x32xf32>
    %38 = arith.subf %6, %37 : vector<8x32xf32>
    %39 = arith.mulf %38, %38 : vector<8x32xf32>
    %cst_21 = arith.constant dense<0.000000e+00> : vector<8xf32>
    %40 = vector.multi_reduction <add>, %39, %cst_21 [1] : vector<8x32xf32> to vector<8xf32>
    %41 = vector.shape_cast %40 : vector<8xf32> to vector<8x1xf32>
    %cst_22 = arith.constant 3.200000e+01 : f32
    %42 = vector.broadcast %cst_22 : f32 to vector<8x1xf32>
    %43 = arith.divf %41, %42 : vector<8x1xf32>
    %cst_23 = arith.constant 9.99999974E-6 : f32
    %44 = vector.broadcast %cst_23 : f32 to vector<8x1xf32>
    %45 = arith.addf %43, %44 : vector<8x1xf32>
    %46 = math.rsqrt %45 : vector<8x1xf32>
    %47 = vector.broadcast %46 : vector<8x1xf32> to vector<8x32xf32>
    %48 = arith.mulf %38, %47 : vector<8x32xf32>
    %49 = vector.broadcast %31 : vector<1x32xf32> to vector<8x32xf32>
    %50 = arith.mulf %48, %49 : vector<8x32xf32>
    %51 = vector.broadcast %32 : vector<1x32xf32> to vector<8x32xf32>
    %52 = arith.addf %50, %51 : vector<8x32xf32>
    %c0_24 = arith.constant 0 : index
    %c0_25 = arith.constant 0 : index
    %53 = vector.load %arg6[%c0_24, %c0_25] : memref<32x32xbf16, #tpu.memory_space<vmem>>, vector<32x32xbf16>
    %c0_26 = arith.constant 0 : index
    %c0_27 = arith.constant 0 : index
    %54 = vector.load %arg7[%c0_26, %c0_27] : memref<32x32xbf16, #tpu.memory_space<vmem>>, vector<32x32xbf16>
    %c0_28 = arith.constant 0 : index
    %c0_29 = arith.constant 0 : index
    %55 = vector.load %arg8[%c0_28, %c0_29] : memref<32x32xbf16, #tpu.memory_space<vmem>>, vector<32x32xbf16>
    %c0_30 = arith.constant 0 : index
    %c0_31 = arith.constant 0 : index
    %56 = vector.load %arg9[%c0_30, %c0_31] : memref<32x32xbf16, #tpu.memory_space<vmem>>, vector<32x32xbf16>
    %c0_32 = arith.constant 0 : index
    %c0_33 = arith.constant 0 : index
    %57 = vector.load %arg10[%c0_32, %c0_33] : memref<1x32xf32, #tpu.memory_space<vmem>>, vector<1x32xf32>
    %58 = arith.truncf %52 : vector<8x32xf32> to vector<8x32xbf16>
    %cst_34 = arith.constant dense<0.000000e+00> : vector<8x32xf32>
    %59 = tpu.matmul %58, %53, %cst_34 {dimension_numbers = #tpu.dot_dimension_numbers<[1], [0], [0], [1], [0, 0, 1, 1], [], []>} : vector<8x32xbf16>, vector<32x32xbf16>, vector<8x32xf32> -> vector<8x32xf32>
    %60 = arith.truncf %30 : vector<16x32xf32> to vector<16x32xbf16>
    %cst_35 = arith.constant dense<0.000000e+00> : vector<16x32xf32>
    %61 = tpu.matmul %60, %54, %cst_35 {dimension_numbers = #tpu.dot_dimension_numbers<[1], [0], [0], [1], [0, 0, 1, 1], [], []>} : vector<16x32xbf16>, vector<32x32xbf16>, vector<16x32xf32> -> vector<16x32xf32>
    %62 = arith.truncf %30 : vector<16x32xf32> to vector<16x32xbf16>
    %cst_36 = arith.constant dense<0.000000e+00> : vector<16x32xf32>
    %63 = tpu.matmul %62, %55, %cst_36 {dimension_numbers = #tpu.dot_dimension_numbers<[1], [0], [0], [1], [0, 0, 1, 1], [], []>} : vector<16x32xbf16>, vector<32x32xbf16>, vector<16x32xf32> -> vector<16x32xf32>
    %64 = vector.extract_strided_slice %59 {offsets = [0, 0], sizes = [8, 8], strides = [1, 1]} : vector<8x32xf32> to vector<8x8xf32>
    %65 = vector.extract_strided_slice %59 {offsets = [0, 8], sizes = [8, 8], strides = [1, 1]} : vector<8x32xf32> to vector<8x8xf32>
    %66 = vector.extract_strided_slice %59 {offsets = [0, 16], sizes = [8, 8], strides = [1, 1]} : vector<8x32xf32> to vector<8x8xf32>
    %67 = vector.extract_strided_slice %59 {offsets = [0, 24], sizes = [8, 8], strides = [1, 1]} : vector<8x32xf32> to vector<8x8xf32>
    %68 = vector.shape_cast %64 : vector<8x8xf32> to vector<1x8x8xf32>
    %69 = vector.shape_cast %65 : vector<8x8xf32> to vector<1x8x8xf32>
    %70 = vector.shape_cast %66 : vector<8x8xf32> to vector<1x8x8xf32>
    %71 = vector.shape_cast %67 : vector<8x8xf32> to vector<1x8x8xf32>
    %72 = tpu.concatenate %68, %69, %70, %71 in 0 : vector<1x8x8xf32>, vector<1x8x8xf32>, vector<1x8x8xf32>, vector<1x8x8xf32> -> vector<4x8x8xf32>
    %73 = arith.truncf %72 : vector<4x8x8xf32> to vector<4x8x8xbf16>
    %74 = vector.extract_strided_slice %61 {offsets = [0, 0], sizes = [16, 8], strides = [1, 1]} : vector<16x32xf32> to vector<16x8xf32>
    %75 = vector.extract_strided_slice %61 {offsets = [0, 8], sizes = [16, 8], strides = [1, 1]} : vector<16x32xf32> to vector<16x8xf32>
    %76 = vector.extract_strided_slice %61 {offsets = [0, 16], sizes = [16, 8], strides = [1, 1]} : vector<16x32xf32> to vector<16x8xf32>
    %77 = vector.extract_strided_slice %61 {offsets = [0, 24], sizes = [16, 8], strides = [1, 1]} : vector<16x32xf32> to vector<16x8xf32>
    %78 = vector.shape_cast %74 : vector<16x8xf32> to vector<1x16x8xf32>
    %79 = vector.shape_cast %75 : vector<16x8xf32> to vector<1x16x8xf32>
    %80 = vector.shape_cast %76 : vector<16x8xf32> to vector<1x16x8xf32>
    %81 = vector.shape_cast %77 : vector<16x8xf32> to vector<1x16x8xf32>
    %82 = tpu.concatenate %78, %79, %80, %81 in 0 : vector<1x16x8xf32>, vector<1x16x8xf32>, vector<1x16x8xf32>, vector<1x16x8xf32> -> vector<4x16x8xf32>
    %83 = arith.truncf %82 : vector<4x16x8xf32> to vector<4x16x8xbf16>
    %84 = vector.extract_strided_slice %63 {offsets = [0, 0], sizes = [16, 8], strides = [1, 1]} : vector<16x32xf32> to vector<16x8xf32>
    %85 = vector.extract_strided_slice %63 {offsets = [0, 8], sizes = [16, 8], strides = [1, 1]} : vector<16x32xf32> to vector<16x8xf32>
    %86 = vector.extract_strided_slice %63 {offsets = [0, 16], sizes = [16, 8], strides = [1, 1]} : vector<16x32xf32> to vector<16x8xf32>
    %87 = vector.extract_strided_slice %63 {offsets = [0, 24], sizes = [16, 8], strides = [1, 1]} : vector<16x32xf32> to vector<16x8xf32>
    %88 = vector.shape_cast %84 : vector<16x8xf32> to vector<1x16x8xf32>
    %89 = vector.shape_cast %85 : vector<16x8xf32> to vector<1x16x8xf32>
    %90 = vector.shape_cast %86 : vector<16x8xf32> to vector<1x16x8xf32>
    %91 = vector.shape_cast %87 : vector<16x8xf32> to vector<1x16x8xf32>
    %92 = tpu.concatenate %88, %89, %90, %91 in 0 : vector<1x16x8xf32>, vector<1x16x8xf32>, vector<1x16x8xf32>, vector<1x16x8xf32> -> vector<4x16x8xf32>
    %93 = arith.truncf %92 : vector<4x16x8xf32> to vector<4x16x8xbf16>
    "tpu.trace_start"() <{level = 10 : i32, message = "hnd,hmd->hnm"}> : () -> ()
    %cst_37 = arith.constant dense<0.000000e+00> : vector<4x8x16xf32>
    %94 = tpu.matmul %73, %83, %cst_37 {dimension_numbers = #tpu.dot_dimension_numbers<[2], [2], [1], [1], [0, 0, 0, 1, 1, 1], [0], [0]>} : vector<4x8x8xbf16>, vector<4x16x8xbf16>, vector<4x8x16xf32> -> vector<4x8x16xf32>
    "tpu.trace_stop"() : () -> ()
    %cst_38 = arith.constant dense<0xFF800000> : vector<4x8xf32>
    %95 = vector.multi_reduction <maximumf>, %94, %cst_38 [2] : vector<4x8x16xf32> to vector<4x8xf32>
    %96 = vector.shape_cast %95 : vector<4x8xf32> to vector<4x8x1xf32>
    %97 = vector.broadcast %96 : vector<4x8x1xf32> to vector<4x8x16xf32>
    %98 = arith.subf %94, %97 : vector<4x8x16xf32>
    %99 = math.exp %98 : vector<4x8x16xf32>
    %cst_39 = arith.constant dense<0.000000e+00> : vector<4x8xf32>
    %100 = vector.multi_reduction <add>, %99, %cst_39 [2] : vector<4x8x16xf32> to vector<4x8xf32>
    %101 = vector.shape_cast %100 : vector<4x8xf32> to vector<4x8x1xf32>
    %102 = tpu.reciprocal %101 {approx = true} : vector<4x8x1xf32> -> vector<4x8x1xf32>
    %103 = vector.broadcast %102 : vector<4x8x1xf32> to vector<4x8x16xf32>
    %104 = arith.mulf %99, %103 : vector<4x8x16xf32>
    %105 = arith.truncf %104 : vector<4x8x16xf32> to vector<4x8x16xbf16>
    "tpu.trace_start"() <{level = 10 : i32, message = "hnm,hmd->hnd"}> : () -> ()
    %cst_40 = arith.constant dense<0.000000e+00> : vector<4x8x8xf32>
    %106 = tpu.matmul %105, %93, %cst_40 {dimension_numbers = #tpu.dot_dimension_numbers<[2], [1], [1], [2], [0, 0, 0, 1, 1, 2], [0], [0]>} : vector<4x8x16xbf16>, vector<4x16x8xbf16>, vector<4x8x8xf32> -> vector<4x8x8xf32>
    "tpu.trace_stop"() : () -> ()
    %107 = vector.extract_strided_slice %106 {offsets = [0, 0, 0], sizes = [1, 8, 8], strides = [1, 1, 1]} : vector<4x8x8xf32> to vector<1x8x8xf32>
    %108 = vector.shape_cast %107 : vector<1x8x8xf32> to vector<8x8xf32>
    %109 = vector.extract_strided_slice %106 {offsets = [1, 0, 0], sizes = [1, 8, 8], strides = [1, 1, 1]} : vector<4x8x8xf32> to vector<1x8x8xf32>
    %110 = vector.shape_cast %109 : vector<1x8x8xf32> to vector<8x8xf32>
    %111 = vector.extract_strided_slice %106 {offsets = [2, 0, 0], sizes = [1, 8, 8], strides = [1, 1, 1]} : vector<4x8x8xf32> to vector<1x8x8xf32>
    %112 = vector.shape_cast %111 : vector<1x8x8xf32> to vector<8x8xf32>
    %113 = vector.extract_strided_slice %106 {offsets = [3, 0, 0], sizes = [1, 8, 8], strides = [1, 1, 1]} : vector<4x8x8xf32> to vector<1x8x8xf32>
    %114 = vector.shape_cast %113 : vector<1x8x8xf32> to vector<8x8xf32>
    %115 = tpu.concatenate %108, %110, %112, %114 in 1 : vector<8x8xf32>, vector<8x8xf32>, vector<8x8xf32>, vector<8x8xf32> -> vector<8x32xf32>
    %116 = arith.truncf %115 : vector<8x32xf32> to vector<8x32xbf16>
    %cst_41 = arith.constant dense<0.000000e+00> : vector<8x32xf32>
    %117 = tpu.matmul %116, %56, %cst_41 {dimension_numbers = #tpu.dot_dimension_numbers<[1], [0], [0], [1], [0, 0, 1, 1], [], []>} : vector<8x32xbf16>, vector<32x32xbf16>, vector<8x32xf32> -> vector<8x32xf32>
    %118 = vector.broadcast %57 : vector<1x32xf32> to vector<8x32xf32>
    %119 = arith.addf %117, %118 : vector<8x32xf32>
    %120 = arith.addf %119, %6 : vector<8x32xf32>
    %c0_42 = arith.constant 0 : index
    %c0_43 = arith.constant 0 : index
    %121 = vector.load %arg11[%c0_42, %c0_43] : memref<1x32xf32, #tpu.memory_space<vmem>>, vector<1x32xf32>
    %c0_44 = arith.constant 0 : index
    %c0_45 = arith.constant 0 : index
    %122 = vector.load %arg12[%c0_44, %c0_45] : memref<1x32xf32, #tpu.memory_space<vmem>>, vector<1x32xf32>
    %cst_46 = arith.constant dense<0.000000e+00> : vector<8xf32>
    %123 = vector.multi_reduction <add>, %120, %cst_46 [1] : vector<8x32xf32> to vector<8xf32>
    %124 = vector.shape_cast %123 : vector<8xf32> to vector<8x1xf32>
    %cst_47 = arith.constant 3.200000e+01 : f32
    %125 = vector.broadcast %cst_47 : f32 to vector<8x1xf32>
    %126 = arith.divf %124, %125 : vector<8x1xf32>
    %127 = vector.broadcast %126 : vector<8x1xf32> to vector<8x32xf32>
    %128 = arith.subf %120, %127 : vector<8x32xf32>
    %129 = arith.mulf %128, %128 : vector<8x32xf32>
    %cst_48 = arith.constant dense<0.000000e+00> : vector<8xf32>
    %130 = vector.multi_reduction <add>, %129, %cst_48 [1] : vector<8x32xf32> to vector<8xf32>
    %131 = vector.shape_cast %130 : vector<8xf32> to vector<8x1xf32>
    %cst_49 = arith.constant 3.200000e+01 : f32
    %132 = vector.broadcast %cst_49 : f32 to vector<8x1xf32>
    %133 = arith.divf %131, %132 : vector<8x1xf32>
    %cst_50 = arith.constant 9.99999974E-6 : f32
    %134 = vector.broadcast %cst_50 : f32 to vector<8x1xf32>
    %135 = arith.addf %133, %134 : vector<8x1xf32>
    %136 = math.rsqrt %135 : vector<8x1xf32>
    %137 = vector.broadcast %136 : vector<8x1xf32> to vector<8x32xf32>
    %138 = arith.mulf %128, %137 : vector<8x32xf32>
    %139 = vector.broadcast %121 : vector<1x32xf32> to vector<8x32xf32>
    %140 = arith.mulf %138, %139 : vector<8x32xf32>
    %141 = vector.broadcast %122 : vector<1x32xf32> to vector<8x32xf32>
    %142 = arith.addf %140, %141 : vector<8x32xf32>
    %143 = arith.addf %142, %6 : vector<8x32xf32>
    %c0_51 = arith.constant 0 : index
    %c0_52 = arith.constant 0 : index
    %144 = vector.load %arg13[%c0_51, %c0_52] : memref<1x32xf32, #tpu.memory_space<vmem>>, vector<1x32xf32>
    %c0_53 = arith.constant 0 : index
    %c0_54 = arith.constant 0 : index
    %145 = vector.load %arg14[%c0_53, %c0_54] : memref<1x32xf32, #tpu.memory_space<vmem>>, vector<1x32xf32>
    %cst_55 = arith.constant dense<0.000000e+00> : vector<8xf32>
    %146 = vector.multi_reduction <add>, %143, %cst_55 [1] : vector<8x32xf32> to vector<8xf32>
    %147 = vector.shape_cast %146 : vector<8xf32> to vector<8x1xf32>
    %cst_56 = arith.constant 3.200000e+01 : f32
    %148 = vector.broadcast %cst_56 : f32 to vector<8x1xf32>
    %149 = arith.divf %147, %148 : vector<8x1xf32>
    %150 = vector.broadcast %149 : vector<8x1xf32> to vector<8x32xf32>
    %151 = arith.subf %143, %150 : vector<8x32xf32>
    %152 = arith.mulf %151, %151 : vector<8x32xf32>
    %cst_57 = arith.constant dense<0.000000e+00> : vector<8xf32>
    %153 = vector.multi_reduction <add>, %152, %cst_57 [1] : vector<8x32xf32> to vector<8xf32>
    %154 = vector.shape_cast %153 : vector<8xf32> to vector<8x1xf32>
    %cst_58 = arith.constant 3.200000e+01 : f32
    %155 = vector.broadcast %cst_58 : f32 to vector<8x1xf32>
    %156 = arith.divf %154, %155 : vector<8x1xf32>
    %cst_59 = arith.constant 9.99999974E-6 : f32
    %157 = vector.broadcast %cst_59 : f32 to vector<8x1xf32>
    %158 = arith.addf %156, %157 : vector<8x1xf32>
    %159 = math.rsqrt %158 : vector<8x1xf32>
    %160 = vector.broadcast %159 : vector<8x1xf32> to vector<8x32xf32>
    %161 = arith.mulf %151, %160 : vector<8x32xf32>
    %162 = vector.broadcast %144 : vector<1x32xf32> to vector<8x32xf32>
    %163 = arith.mulf %161, %162 : vector<8x32xf32>
    %164 = vector.broadcast %145 : vector<1x32xf32> to vector<8x32xf32>
    %165 = arith.addf %163, %164 : vector<8x32xf32>
    %c0_60 = arith.constant 0 : index
    %c0_61 = arith.constant 0 : index
    %166 = vector.load %arg15[%c0_60, %c0_61] : memref<1x16xf32, #tpu.memory_space<vmem>>, vector<1x16xf32>
    %c0_62 = arith.constant 0 : index
    %c0_63 = arith.constant 0 : index
    %167 = vector.load %arg16[%c0_62, %c0_63] : memref<1x16xf32, #tpu.memory_space<vmem>>, vector<1x16xf32>
    %cst_64 = arith.constant dense<0.000000e+00> : vector<8xf32>
    %168 = vector.multi_reduction <add>, %8, %cst_64 [1] : vector<8x16xf32> to vector<8xf32>
    %169 = vector.shape_cast %168 : vector<8xf32> to vector<8x1xf32>
    %cst_65 = arith.constant 1.600000e+01 : f32
    %170 = vector.broadcast %cst_65 : f32 to vector<8x1xf32>
    %171 = arith.divf %169, %170 : vector<8x1xf32>
    %172 = vector.broadcast %171 : vector<8x1xf32> to vector<8x16xf32>
    %173 = arith.subf %8, %172 : vector<8x16xf32>
    %174 = arith.mulf %173, %173 : vector<8x16xf32>
    %cst_66 = arith.constant dense<0.000000e+00> : vector<8xf32>
    %175 = vector.multi_reduction <add>, %174, %cst_66 [1] : vector<8x16xf32> to vector<8xf32>
    %176 = vector.shape_cast %175 : vector<8xf32> to vector<8x1xf32>
    %cst_67 = arith.constant 1.600000e+01 : f32
    %177 = vector.broadcast %cst_67 : f32 to vector<8x1xf32>
    %178 = arith.divf %176, %177 : vector<8x1xf32>
    %cst_68 = arith.constant 9.99999974E-6 : f32
    %179 = vector.broadcast %cst_68 : f32 to vector<8x1xf32>
    %180 = arith.addf %178, %179 : vector<8x1xf32>
    %181 = math.rsqrt %180 : vector<8x1xf32>
    %182 = vector.broadcast %181 : vector<8x1xf32> to vector<8x16xf32>
    %183 = arith.mulf %173, %182 : vector<8x16xf32>
    %184 = vector.broadcast %166 : vector<1x16xf32> to vector<8x16xf32>
    %185 = arith.mulf %183, %184 : vector<8x16xf32>
    %186 = vector.broadcast %167 : vector<1x16xf32> to vector<8x16xf32>
    %187 = arith.addf %185, %186 : vector<8x16xf32>
    %c0_69 = arith.constant 0 : index
    %c0_70 = arith.constant 0 : index
    %188 = vector.load %arg17[%c0_69, %c0_70] : memref<32x32xbf16, #tpu.memory_space<vmem>>, vector<32x32xbf16>
    %c0_71 = arith.constant 0 : index
    %c0_72 = arith.constant 0 : index
    %189 = vector.load %arg18[%c0_71, %c0_72] : memref<16x32xbf16, #tpu.memory_space<vmem>>, vector<16x32xbf16>
    %c0_73 = arith.constant 0 : index
    %c0_74 = arith.constant 0 : index
    %190 = vector.load %arg19[%c0_73, %c0_74] : memref<16x32xbf16, #tpu.memory_space<vmem>>, vector<16x32xbf16>
    %c0_75 = arith.constant 0 : index
    %c0_76 = arith.constant 0 : index
    %191 = vector.load %arg20[%c0_75, %c0_76] : memref<32x32xbf16, #tpu.memory_space<vmem>>, vector<32x32xbf16>
    %c0_77 = arith.constant 0 : index
    %c0_78 = arith.constant 0 : index
    %192 = vector.load %arg21[%c0_77, %c0_78] : memref<1x32xf32, #tpu.memory_space<vmem>>, vector<1x32xf32>
    %193 = arith.truncf %165 : vector<8x32xf32> to vector<8x32xbf16>
    %cst_79 = arith.constant dense<0.000000e+00> : vector<8x32xf32>
    %194 = tpu.matmul %193, %188, %cst_79 {dimension_numbers = #tpu.dot_dimension_numbers<[1], [0], [0], [1], [0, 0, 1, 1], [], []>} : vector<8x32xbf16>, vector<32x32xbf16>, vector<8x32xf32> -> vector<8x32xf32>
    %195 = arith.truncf %187 : vector<8x16xf32> to vector<8x16xbf16>
    %cst_80 = arith.constant dense<0.000000e+00> : vector<8x32xf32>
    %196 = tpu.matmul %195, %189, %cst_80 {dimension_numbers = #tpu.dot_dimension_numbers<[1], [0], [0], [1], [0, 0, 1, 1], [], []>} : vector<8x16xbf16>, vector<16x32xbf16>, vector<8x32xf32> -> vector<8x32xf32>
    %197 = arith.truncf %187 : vector<8x16xf32> to vector<8x16xbf16>
    %cst_81 = arith.constant dense<0.000000e+00> : vector<8x32xf32>
    %198 = tpu.matmul %197, %190, %cst_81 {dimension_numbers = #tpu.dot_dimension_numbers<[1], [0], [0], [1], [0, 0, 1, 1], [], []>} : vector<8x16xbf16>, vector<16x32xbf16>, vector<8x32xf32> -> vector<8x32xf32>
    %199 = vector.extract_strided_slice %194 {offsets = [0, 0], sizes = [8, 8], strides = [1, 1]} : vector<8x32xf32> to vector<8x8xf32>
    %200 = vector.extract_strided_slice %194 {offsets = [0, 8], sizes = [8, 8], strides = [1, 1]} : vector<8x32xf32> to vector<8x8xf32>
    %201 = vector.extract_strided_slice %194 {offsets = [0, 16], sizes = [8, 8], strides = [1, 1]} : vector<8x32xf32> to vector<8x8xf32>
    %202 = vector.extract_strided_slice %194 {offsets = [0, 24], sizes = [8, 8], strides = [1, 1]} : vector<8x32xf32> to vector<8x8xf32>
    %203 = vector.shape_cast %199 : vector<8x8xf32> to vector<1x8x8xf32>
    %204 = vector.shape_cast %200 : vector<8x8xf32> to vector<1x8x8xf32>
    %205 = vector.shape_cast %201 : vector<8x8xf32> to vector<1x8x8xf32>
    %206 = vector.shape_cast %202 : vector<8x8xf32> to vector<1x8x8xf32>
    %207 = tpu.concatenate %203, %204, %205, %206 in 0 : vector<1x8x8xf32>, vector<1x8x8xf32>, vector<1x8x8xf32>, vector<1x8x8xf32> -> vector<4x8x8xf32>
    %208 = arith.truncf %207 : vector<4x8x8xf32> to vector<4x8x8xbf16>
    %209 = vector.extract_strided_slice %196 {offsets = [0, 0], sizes = [8, 8], strides = [1, 1]} : vector<8x32xf32> to vector<8x8xf32>
    %210 = vector.extract_strided_slice %196 {offsets = [0, 8], sizes = [8, 8], strides = [1, 1]} : vector<8x32xf32> to vector<8x8xf32>
    %211 = vector.extract_strided_slice %196 {offsets = [0, 16], sizes = [8, 8], strides = [1, 1]} : vector<8x32xf32> to vector<8x8xf32>
    %212 = vector.extract_strided_slice %196 {offsets = [0, 24], sizes = [8, 8], strides = [1, 1]} : vector<8x32xf32> to vector<8x8xf32>
    %213 = vector.shape_cast %209 : vector<8x8xf32> to vector<1x8x8xf32>
    %214 = vector.shape_cast %210 : vector<8x8xf32> to vector<1x8x8xf32>
    %215 = vector.shape_cast %211 : vector<8x8xf32> to vector<1x8x8xf32>
    %216 = vector.shape_cast %212 : vector<8x8xf32> to vector<1x8x8xf32>
    %217 = tpu.concatenate %213, %214, %215, %216 in 0 : vector<1x8x8xf32>, vector<1x8x8xf32>, vector<1x8x8xf32>, vector<1x8x8xf32> -> vector<4x8x8xf32>
    %218 = arith.truncf %217 : vector<4x8x8xf32> to vector<4x8x8xbf16>
    %219 = vector.extract_strided_slice %198 {offsets = [0, 0], sizes = [8, 8], strides = [1, 1]} : vector<8x32xf32> to vector<8x8xf32>
    %220 = vector.extract_strided_slice %198 {offsets = [0, 8], sizes = [8, 8], strides = [1, 1]} : vector<8x32xf32> to vector<8x8xf32>
    %221 = vector.extract_strided_slice %198 {offsets = [0, 16], sizes = [8, 8], strides = [1, 1]} : vector<8x32xf32> to vector<8x8xf32>
    %222 = vector.extract_strided_slice %198 {offsets = [0, 24], sizes = [8, 8], strides = [1, 1]} : vector<8x32xf32> to vector<8x8xf32>
    %223 = vector.shape_cast %219 : vector<8x8xf32> to vector<1x8x8xf32>
    %224 = vector.shape_cast %220 : vector<8x8xf32> to vector<1x8x8xf32>
    %225 = vector.shape_cast %221 : vector<8x8xf32> to vector<1x8x8xf32>
    %226 = vector.shape_cast %222 : vector<8x8xf32> to vector<1x8x8xf32>
    %227 = tpu.concatenate %223, %224, %225, %226 in 0 : vector<1x8x8xf32>, vector<1x8x8xf32>, vector<1x8x8xf32>, vector<1x8x8xf32> -> vector<4x8x8xf32>
    %228 = arith.truncf %227 : vector<4x8x8xf32> to vector<4x8x8xbf16>
    "tpu.trace_start"() <{level = 10 : i32, message = "hnd,hmd->hnm"}> : () -> ()
    %cst_82 = arith.constant dense<0.000000e+00> : vector<4x8x8xf32>
    %229 = tpu.matmul %208, %218, %cst_82 {dimension_numbers = #tpu.dot_dimension_numbers<[2], [2], [1], [1], [0, 0, 0, 1, 1, 1], [0], [0]>} : vector<4x8x8xbf16>, vector<4x8x8xbf16>, vector<4x8x8xf32> -> vector<4x8x8xf32>
    "tpu.trace_stop"() : () -> ()
    %cst_83 = arith.constant dense<0xFF800000> : vector<4x8xf32>
    %230 = vector.multi_reduction <maximumf>, %229, %cst_83 [2] : vector<4x8x8xf32> to vector<4x8xf32>
    %231 = vector.shape_cast %230 : vector<4x8xf32> to vector<4x8x1xf32>
    %232 = vector.broadcast %231 : vector<4x8x1xf32> to vector<4x8x8xf32>
    %233 = arith.subf %229, %232 : vector<4x8x8xf32>
    %234 = math.exp %233 : vector<4x8x8xf32>
    %cst_84 = arith.constant dense<0.000000e+00> : vector<4x8xf32>
    %235 = vector.multi_reduction <add>, %234, %cst_84 [2] : vector<4x8x8xf32> to vector<4x8xf32>
    %236 = vector.shape_cast %235 : vector<4x8xf32> to vector<4x8x1xf32>
    %237 = tpu.reciprocal %236 {approx = true} : vector<4x8x1xf32> -> vector<4x8x1xf32>
    %238 = vector.broadcast %237 : vector<4x8x1xf32> to vector<4x8x8xf32>
    %239 = arith.mulf %234, %238 : vector<4x8x8xf32>
    %240 = arith.truncf %239 : vector<4x8x8xf32> to vector<4x8x8xbf16>
    "tpu.trace_start"() <{level = 10 : i32, message = "hnm,hmd->hnd"}> : () -> ()
    %cst_85 = arith.constant dense<0.000000e+00> : vector<4x8x8xf32>
    %241 = tpu.matmul %240, %228, %cst_85 {dimension_numbers = #tpu.dot_dimension_numbers<[2], [1], [1], [2], [0, 0, 0, 1, 1, 2], [0], [0]>} : vector<4x8x8xbf16>, vector<4x8x8xbf16>, vector<4x8x8xf32> -> vector<4x8x8xf32>
    "tpu.trace_stop"() : () -> ()
    %242 = vector.extract_strided_slice %241 {offsets = [0, 0, 0], sizes = [1, 8, 8], strides = [1, 1, 1]} : vector<4x8x8xf32> to vector<1x8x8xf32>
    %243 = vector.shape_cast %242 : vector<1x8x8xf32> to vector<8x8xf32>
    %244 = vector.extract_strided_slice %241 {offsets = [1, 0, 0], sizes = [1, 8, 8], strides = [1, 1, 1]} : vector<4x8x8xf32> to vector<1x8x8xf32>
    %245 = vector.shape_cast %244 : vector<1x8x8xf32> to vector<8x8xf32>
    %246 = vector.extract_strided_slice %241 {offsets = [2, 0, 0], sizes = [1, 8, 8], strides = [1, 1, 1]} : vector<4x8x8xf32> to vector<1x8x8xf32>
    %247 = vector.shape_cast %246 : vector<1x8x8xf32> to vector<8x8xf32>
    %248 = vector.extract_strided_slice %241 {offsets = [3, 0, 0], sizes = [1, 8, 8], strides = [1, 1, 1]} : vector<4x8x8xf32> to vector<1x8x8xf32>
    %249 = vector.shape_cast %248 : vector<1x8x8xf32> to vector<8x8xf32>
    %250 = tpu.concatenate %243, %245, %247, %249 in 1 : vector<8x8xf32>, vector<8x8xf32>, vector<8x8xf32>, vector<8x8xf32> -> vector<8x32xf32>
    %251 = arith.truncf %250 : vector<8x32xf32> to vector<8x32xbf16>
    %cst_86 = arith.constant dense<0.000000e+00> : vector<8x32xf32>
    %252 = tpu.matmul %251, %191, %cst_86 {dimension_numbers = #tpu.dot_dimension_numbers<[1], [0], [0], [1], [0, 0, 1, 1], [], []>} : vector<8x32xbf16>, vector<32x32xbf16>, vector<8x32xf32> -> vector<8x32xf32>
    %253 = vector.broadcast %192 : vector<1x32xf32> to vector<8x32xf32>
    %254 = arith.addf %252, %253 : vector<8x32xf32>
    %255 = arith.addf %254, %143 : vector<8x32xf32>
    %c0_87 = arith.constant 0 : index
    %c0_88 = arith.constant 0 : index
    %256 = vector.load %arg22[%c0_87, %c0_88] : memref<1x32xf32, #tpu.memory_space<vmem>>, vector<1x32xf32>
    %c0_89 = arith.constant 0 : index
    %c0_90 = arith.constant 0 : index
    %257 = vector.load %arg23[%c0_89, %c0_90] : memref<1x32xf32, #tpu.memory_space<vmem>>, vector<1x32xf32>
    %cst_91 = arith.constant dense<0.000000e+00> : vector<8xf32>
    %258 = vector.multi_reduction <add>, %255, %cst_91 [1] : vector<8x32xf32> to vector<8xf32>
    %259 = vector.shape_cast %258 : vector<8xf32> to vector<8x1xf32>
    %cst_92 = arith.constant 3.200000e+01 : f32
    %260 = vector.broadcast %cst_92 : f32 to vector<8x1xf32>
    %261 = arith.divf %259, %260 : vector<8x1xf32>
    %262 = vector.broadcast %261 : vector<8x1xf32> to vector<8x32xf32>
    %263 = arith.subf %255, %262 : vector<8x32xf32>
    %264 = arith.mulf %263, %263 : vector<8x32xf32>
    %cst_93 = arith.constant dense<0.000000e+00> : vector<8xf32>
    %265 = vector.multi_reduction <add>, %264, %cst_93 [1] : vector<8x32xf32> to vector<8xf32>
    %266 = vector.shape_cast %265 : vector<8xf32> to vector<8x1xf32>
    %cst_94 = arith.constant 3.200000e+01 : f32
    %267 = vector.broadcast %cst_94 : f32 to vector<8x1xf32>
    %268 = arith.divf %266, %267 : vector<8x1xf32>
    %cst_95 = arith.constant 9.99999974E-6 : f32
    %269 = vector.broadcast %cst_95 : f32 to vector<8x1xf32>
    %270 = arith.addf %268, %269 : vector<8x1xf32>
    %271 = math.rsqrt %270 : vector<8x1xf32>
    %272 = vector.broadcast %271 : vector<8x1xf32> to vector<8x32xf32>
    %273 = arith.mulf %263, %272 : vector<8x32xf32>
    %274 = vector.broadcast %256 : vector<1x32xf32> to vector<8x32xf32>
    %275 = arith.mulf %273, %274 : vector<8x32xf32>
    %276 = vector.broadcast %257 : vector<1x32xf32> to vector<8x32xf32>
    %277 = arith.addf %275, %276 : vector<8x32xf32>
    %278 = arith.addf %277, %143 : vector<8x32xf32>
    %c0_96 = arith.constant 0 : index
    %c0_97 = arith.constant 0 : index
    %279 = vector.load %arg24[%c0_96, %c0_97] : memref<1x32xf32, #tpu.memory_space<vmem>>, vector<1x32xf32>
    %c0_98 = arith.constant 0 : index
    %c0_99 = arith.constant 0 : index
    %280 = vector.load %arg25[%c0_98, %c0_99] : memref<1x32xf32, #tpu.memory_space<vmem>>, vector<1x32xf32>
    %cst_100 = arith.constant dense<0.000000e+00> : vector<8xf32>
    %281 = vector.multi_reduction <add>, %278, %cst_100 [1] : vector<8x32xf32> to vector<8xf32>
    %282 = vector.shape_cast %281 : vector<8xf32> to vector<8x1xf32>
    %cst_101 = arith.constant 3.200000e+01 : f32
    %283 = vector.broadcast %cst_101 : f32 to vector<8x1xf32>
    %284 = arith.divf %282, %283 : vector<8x1xf32>
    %285 = vector.broadcast %284 : vector<8x1xf32> to vector<8x32xf32>
    %286 = arith.subf %278, %285 : vector<8x32xf32>
    %287 = arith.mulf %286, %286 : vector<8x32xf32>
    %cst_102 = arith.constant dense<0.000000e+00> : vector<8xf32>
    %288 = vector.multi_reduction <add>, %287, %cst_102 [1] : vector<8x32xf32> to vector<8xf32>
    %289 = vector.shape_cast %288 : vector<8xf32> to vector<8x1xf32>
    %cst_103 = arith.constant 3.200000e+01 : f32
    %290 = vector.broadcast %cst_103 : f32 to vector<8x1xf32>
    %291 = arith.divf %289, %290 : vector<8x1xf32>
    %cst_104 = arith.constant 9.99999974E-6 : f32
    %292 = vector.broadcast %cst_104 : f32 to vector<8x1xf32>
    %293 = arith.addf %291, %292 : vector<8x1xf32>
    %294 = math.rsqrt %293 : vector<8x1xf32>
    %295 = vector.broadcast %294 : vector<8x1xf32> to vector<8x32xf32>
    %296 = arith.mulf %286, %295 : vector<8x32xf32>
    %297 = vector.broadcast %279 : vector<1x32xf32> to vector<8x32xf32>
    %298 = arith.mulf %296, %297 : vector<8x32xf32>
    %299 = vector.broadcast %280 : vector<1x32xf32> to vector<8x32xf32>
    %300 = arith.addf %298, %299 : vector<8x32xf32>
    %301 = arith.truncf %300 : vector<8x32xf32> to vector<8x32xbf16>
    %c0_105 = arith.constant 0 : index
    %c0_106 = arith.constant 0 : index
    %302 = vector.load %arg26[%c0_105, %c0_106] : memref<32x32xbf16, #tpu.memory_space<vmem>>, vector<32x32xbf16>
    %cst_107 = arith.constant dense<0.000000e+00> : vector<8x32xf32>
    %303 = tpu.matmul %301, %302, %cst_107 {dimension_numbers = #tpu.dot_dimension_numbers<[1], [0], [0], [1], [0, 0, 1, 1], [], []>} : vector<8x32xbf16>, vector<32x32xbf16>, vector<8x32xf32> -> vector<8x32xf32>
    %c0_108 = arith.constant 0 : index
    %c0_109 = arith.constant 0 : index
    %304 = vector.load %arg27[%c0_108, %c0_109] : memref<1x32xf32, #tpu.memory_space<vmem>>, vector<1x32xf32>
    %305 = vector.broadcast %304 : vector<1x32xf32> to vector<8x32xf32>
    %306 = arith.addf %303, %305 : vector<8x32xf32>
    %cst_110 = arith.constant 5.000000e-01 : f32
    %307 = vector.broadcast %cst_110 : f32 to vector<8x32xf32>
    %308 = arith.mulf %307, %306 : vector<8x32xf32>
    %cst_111 = arith.constant 0.707106769 : f32
    %309 = vector.broadcast %cst_111 : f32 to vector<8x32xf32>
    %310 = arith.mulf %306, %309 : vector<8x32xf32>
    %311 = math.erf %310 : vector<8x32xf32>
    %cst_112 = arith.constant 1.000000e+00 : f32
    %312 = vector.broadcast %cst_112 : f32 to vector<8x32xf32>
    %313 = arith.addf %312, %311 : vector<8x32xf32>
    %314 = arith.mulf %308, %313 : vector<8x32xf32>
    %315 = arith.truncf %314 : vector<8x32xf32> to vector<8x32xbf16>
    %c0_113 = arith.constant 0 : index
    %c0_114 = arith.constant 0 : index
    %316 = vector.load %arg28[%c0_113, %c0_114] : memref<32x32xbf16, #tpu.memory_space<vmem>>, vector<32x32xbf16>
    %cst_115 = arith.constant dense<0.000000e+00> : vector<8x32xf32>
    %317 = tpu.matmul %315, %316, %cst_115 {dimension_numbers = #tpu.dot_dimension_numbers<[1], [0], [0], [1], [0, 0, 1, 1], [], []>} : vector<8x32xbf16>, vector<32x32xbf16>, vector<8x32xf32> -> vector<8x32xf32>
    %c0_116 = arith.constant 0 : index
    %c0_117 = arith.constant 0 : index
    %318 = vector.load %arg29[%c0_116, %c0_117] : memref<1x32xf32, #tpu.memory_space<vmem>>, vector<1x32xf32>
    %319 = vector.broadcast %318 : vector<1x32xf32> to vector<8x32xf32>
    %320 = arith.addf %317, %319 : vector<8x32xf32>
    %321 = arith.addf %320, %278 : vector<8x32xf32>
    %c0_118 = arith.constant 0 : index
    %c0_119 = arith.constant 0 : index
    %c0_120 = arith.constant 0 : index
    %322 = vector.load %arg30[%c0_118, %c0_119, %c0_120] : memref<1x8x32xf32, #tpu.memory_space<vmem>>, vector<1x8x32xf32>
    %323 = vector.shape_cast %322 : vector<1x8x32xf32> to vector<8x32xf32>
    %324 = vector.shape_cast %321 : vector<8x32xf32> to vector<1x8x32xf32>
    tpu.vector_store %arg30[%c0_118, %c0_119, %c0_120], %324 {strides = array<i32>} : memref<1x8x32xf32, #tpu.memory_space<vmem>>, vector<1x8x32xf32>,
    return
  }
  func.func @transform_0(%arg0: i32, %arg1: i32) -> (i32, i32, i32) {
    %c0_i32 = arith.constant 0 : i32
    %c0_i32_0 = arith.constant 0 : i32
    %c0_i32_1 = arith.constant 0 : i32
    return %arg0, %c0_i32, %c0_i32_0 : i32, i32, i32
  }
  func.func @transform_1(%arg0: i32, %arg1: i32) -> (i32, i32, i32) {
    %c0_i32 = arith.constant 0 : i32
    %c0_i32_0 = arith.constant 0 : i32
    %c0_i32_1 = arith.constant 0 : i32
    return %arg0, %c0_i32, %c0_i32_0 : i32, i32, i32
  }
  func.func @transform_2(%arg0: i32, %arg1: i32) -> (i32, i32) {
    %c0_i32 = arith.constant 0 : i32
    %c0_i32_0 = arith.constant 0 : i32
    %c0_i32_1 = arith.constant 0 : i32
    return %c0_i32, %c0_i32_0 : i32, i32
  }
  func.func @transform_3(%arg0: i32, %arg1: i32) -> (i32, i32) {
    %c0_i32 = arith.constant 0 : i32
    %c0_i32_0 = arith.constant 0 : i32
    %c0_i32_1 = arith.constant 0 : i32
    return %c0_i32, %c0_i32_0 : i32, i32
  }
  func.func @transform_4(%arg0: i32, %arg1: i32) -> (i32, i32) {
    %c0_i32 = arith.constant 0 : i32
    %c0_i32_0 = arith.constant 0 : i32
    %c0_i32_1 = arith.constant 0 : i32
    return %c0_i32, %c0_i32_0 : i32, i32
  }
  func.func @transform_5(%arg0: i32, %arg1: i32) -> (i32, i32) {
    %c0_i32 = arith.constant 0 : i32
    %c0_i32_0 = arith.constant 0 : i32
    %c0_i32_1 = arith.constant 0 : i32
    return %c0_i32, %c0_i32_0 : i32, i32
  }
  func.func @transform_6(%arg0: i32, %arg1: i32) -> (i32, i32) {
    %c0_i32 = arith.constant 0 : i32
    %c0_i32_0 = arith.constant 0 : i32
    %c0_i32_1 = arith.constant 0 : i32
    return %c0_i32, %c0_i32_0 : i32, i32
  }
  func.func @transform_7(%arg0: i32, %arg1: i32) -> (i32, i32) {
    %c0_i32 = arith.constant 0 : i32
    %c0_i32_0 = arith.constant 0 : i32
    %c0_i32_1 = arith.constant 0 : i32
    return %c0_i32, %c0_i32_0 : i32, i32
  }
  func.func @transform_8(%arg0: i32, %arg1: i32) -> (i32, i32) {
    %c0_i32 = arith.constant 0 : i32
    %c0_i32_0 = arith.constant 0 : i32
    %c0_i32_1 = arith.constant 0 : i32
    return %c0_i32, %c0_i32_0 : i32, i32
  }
  func.func @transform_9(%arg0: i32, %arg1: i32) -> (i32, i32) {
    %c0_i32 = arith.constant 0 : i32
    %c0_i32_0 = arith.constant 0 : i32
    %c0_i32_1 = arith.constant 0 : i32
    return %c0_i32, %c0_i32_0 : i32, i32
  }
  func.func @transform_10(%arg0: i32, %arg1: i32) -> (i32, i32) {
    %c0_i32 = arith.constant 0 : i32
    %c0_i32_0 = arith.constant 0 : i32
    %c0_i32_1 = arith.constant 0 : i32
    return %c0_i32, %c0_i32_0 : i32, i32
  }
  func.func @transform_11(%arg0: i32, %arg1: i32) -> (i32, i32) {
    %c0_i32 = arith.constant 0 : i32
    %c0_i32_0 = arith.constant 0 : i32
    %c0_i32_1 = arith.constant 0 : i32
    return %c0_i32, %c0_i32_0 : i32, i32
  }
  func.func @transform_12(%arg0: i32, %arg1: i32) -> (i32, i32) {
    %c0_i32 = arith.constant 0 : i32
    %c0_i32_0 = arith.constant 0 : i32
    %c0_i32_1 = arith.constant 0 : i32
    return %c0_i32, %c0_i32_0 : i32, i32
  }
  func.func @transform_13(%arg0: i32, %arg1: i32) -> (i32, i32) {
    %c0_i32 = arith.constant 0 : i32
    %c0_i32_0 = arith.constant 0 : i32
    %c0_i32_1 = arith.constant 0 : i32
    return %c0_i32, %c0_i32_0 : i32, i32
  }
  func.func @transform_14(%arg0: i32, %arg1: i32) -> (i32, i32) {
    %c0_i32 = arith.constant 0 : i32
    %c0_i32_0 = arith.constant 0 : i32
    %c0_i32_1 = arith.constant 0 : i32
    return %c0_i32, %c0_i32_0 : i32, i32
  }
  func.func @transform_15(%arg0: i32, %arg1: i32) -> (i32, i32) {
    %c0_i32 = arith.constant 0 : i32
    %c0_i32_0 = arith.constant 0 : i32
    %c0_i32_1 = arith.constant 0 : i32
    return %c0_i32, %c0_i32_0 : i32, i32
  }
  func.func @transform_16(%arg0: i32, %arg1: i32) -> (i32, i32) {
    %c0_i32 = arith.constant 0 : i32
    %c0_i32_0 = arith.constant 0 : i32
    %c0_i32_1 = arith.constant 0 : i32
    return %c0_i32, %c0_i32_0 : i32, i32
  }
  func.func @transform_17(%arg0: i32, %arg1: i32) -> (i32, i32) {
    %c0_i32 = arith.constant 0 : i32
    %c0_i32_0 = arith.constant 0 : i32
    %c0_i32_1 = arith.constant 0 : i32
    return %c0_i32, %c0_i32_0 : i32, i32
  }
  func.func @transform_18(%arg0: i32, %arg1: i32) -> (i32, i32) {
    %c0_i32 = arith.constant 0 : i32
    %c0_i32_0 = arith.constant 0 : i32
    %c0_i32_1 = arith.constant 0 : i32
    return %c0_i32, %c0_i32_0 : i32, i32
  }
  func.func @transform_19(%arg0: i32, %arg1: i32) -> (i32, i32) {
    %c0_i32 = arith.constant 0 : i32
    %c0_i32_0 = arith.constant 0 : i32
    %c0_i32_1 = arith.constant 0 : i32
    return %c0_i32, %c0_i32_0 : i32, i32
  }
  func.func @transform_20(%arg0: i32, %arg1: i32) -> (i32, i32) {
    %c0_i32 = arith.constant 0 : i32
    %c0_i32_0 = arith.constant 0 : i32
    %c0_i32_1 = arith.constant 0 : i32
    return %c0_i32, %c0_i32_0 : i32, i32
  }
  func.func @transform_21(%arg0: i32, %arg1: i32) -> (i32, i32) {
    %c0_i32 = arith.constant 0 : i32
    %c0_i32_0 = arith.constant 0 : i32
    %c0_i32_1 = arith.constant 0 : i32
    return %c0_i32, %c0_i32_0 : i32, i32
  }
  func.func @transform_22(%arg0: i32, %arg1: i32) -> (i32, i32) {
    %c0_i32 = arith.constant 0 : i32
    %c0_i32_0 = arith.constant 0 : i32
    %c0_i32_1 = arith.constant 0 : i32
    return %c0_i32, %c0_i32_0 : i32, i32
  }
  func.func @transform_23(%arg0: i32, %arg1: i32) -> (i32, i32) {
    %c0_i32 = arith.constant 0 : i32
    %c0_i32_0 = arith.constant 0 : i32
    %c0_i32_1 = arith.constant 0 : i32
    return %c0_i32, %c0_i32_0 : i32, i32
  }
  func.func @transform_24(%arg0: i32, %arg1: i32) -> (i32, i32) {
    %c0_i32 = arith.constant 0 : i32
    %c0_i32_0 = arith.constant 0 : i32
    %c0_i32_1 = arith.constant 0 : i32
    return %c0_i32, %c0_i32_0 : i32, i32
  }
  func.func @transform_25(%arg0: i32, %arg1: i32) -> (i32, i32) {
    %c0_i32 = arith.constant 0 : i32
    %c0_i32_0 = arith.constant 0 : i32
    %c0_i32_1 = arith.constant 0 : i32
    return %c0_i32, %c0_i32_0 : i32, i32
  }
  func.func @transform_26(%arg0: i32, %arg1: i32) -> (i32, i32) {
    %c0_i32 = arith.constant 0 : i32
    %c0_i32_0 = arith.constant 0 : i32
    %c0_i32_1 = arith.constant 0 : i32
    return %c0_i32, %c0_i32_0 : i32, i32
  }
  func.func @transform_27(%arg0: i32, %arg1: i32) -> (i32, i32) {
    %c0_i32 = arith.constant 0 : i32
    %c0_i32_0 = arith.constant 0 : i32
    %c0_i32_1 = arith.constant 0 : i32
    return %c0_i32, %c0_i32_0 : i32, i32
  }
  func.func @transform_28(%arg0: i32, %arg1: i32) -> (i32, i32, i32) {
    %c0_i32 = arith.constant 0 : i32
    %c0_i32_0 = arith.constant 0 : i32
    return %arg0, %arg1, %c0_i32 : i32, i32, i32
  }
}

</mosaic_0001>

<bundles_post_ra>
// kernel: tpu_custom_call.1
= control target key start
LH: loop header
LB: loop body
LE: loop exit
PB: predicated region body
PF: predicated region fallthrough
CT: control target
= control target key end

     0   :  { %s4703_s0 = inlined_call_operand.hbm [shape: f32[2,16,32], index: 0, kind: input, shape index: {}]   ;;  %s4704_s1 = inlined_call_operand.hbm [shape: f32[2,8,16], index: 1, kind: input, shape index: {}]   ;;  %s4705_s2 = inlined_call_operand.vmem [shape: f32[1,32], index: 2, kind: input, shape index: {}]   ;;  %s4706_s3 = inlined_call_operand.hbm [shape: f32[1,32], index: 3, kind: input, shape index: {}]   ;;  %s4707_s4 = inlined_call_operand.hbm [shape: bf16[32,32], index: 4, kind: input, shape index: {}]   ;;  %s4708_s5 = inlined_call_operand.hbm [shape: bf16[32,32], index: 5, kind: input, shape index: {}]   ;;  %s4709_s6 = inlined_call_operand.hbm [shape: bf16[32,32], index: 6, kind: input, shape index: {}]   ;;  %s4710_s7 = inlined_call_operand.hbm [shape: bf16[32,32], index: 7, kind: input, shape index: {}]   ;;  %s4711_s8 = inlined_call_operand.hbm [shape: f32[1,32], index: 8, kind: input, shape index: {}]   ;;  %s4712_s9 = inlined_call_operand.hbm [shape: f32[1,32], index: 9, kind: input, shape index: {}]   ;;  %s4713_s10 = inlined_call_operand.hbm [shape: f32[1,32], index: 10, kind: input, shape index: {}]   ;;  %s4714_s11 = inlined_call_operand.hbm [shape: f32[1,32], index: 11, kind: input, shape index: {}]   ;;  %s4715_s12 = inlined_call_operand.hbm [shape: f32[1,32], index: 12, kind: input, shape index: {}]   ;;  %s4716_s13 = inlined_call_operand.hbm [shape: f32[1,16], index: 13, kind: input, shape index: {}]   ;;  %s4717_s14 = inlined_call_operand.hbm [shape: f32[1,16], index: 14, kind: input, shape index: {}]   ;;  %s4718_s15 = inlined_call_operand.hbm [shape: bf16[32,32], index: 15, kind: input, shape index: {}]   ;;  %s4719_s16 = inlined_call_operand.hbm [shape: bf16[16,32], index: 16, kind: input, shape index: {}]   ;;  %s4720_s17 = inlined_call_operand.hbm [shape: bf16[16,32], index: 17, kind: input, shape index: {}]   ;;  %s4721_s18 = inlined_call_operand.vmem [shape: bf16[32,32], index: 18, kind: input, shape index: {}]   ;;  %s4722_s19 = inlined_call_operand.vmem [shape: f32[1,32], index: 19, kind: input, shape index: {}]   ;;  %s4723_s20 = inlined_call_operand.vmem [shape: f32[1,32], index: 20, kind: input, shape index: {}]   ;;  %s4724_s21 = inlined_call_operand.vmem [shape: f32[1,32], index: 21, kind: input, shape index: {}]   ;;  %s4725_s22 = inlined_call_operand.vmem [shape: f32[1,32], index: 22, kind: input, shape index: {}]   ;;  %s4726_s23 = inlined_call_operand.vmem [shape: f32[1,32], index: 23, kind: input, shape index: {}]   ;;  %s4727_s24 = inlined_call_operand.hbm [shape: bf16[32,32], index: 24, kind: input, shape index: {}]   ;;  %s4728_s25 = inlined_call_operand.vmem [shape: f32[1,32], index: 25, kind: input, shape index: {}]   ;;  %s4729_s26 = inlined_call_operand.hbm [shape: bf16[32,32], index: 26, kind: input, shape index: {}]   ;;  %s4730_s27 = inlined_call_operand.vmem [shape: f32[1,32], index: 27, kind: input, shape index: {}]   ;;  %s4731_s28 = inlined_call_operand.hbm [shape: f32[2,16,32], index: 28, kind: output, shape index: {}]  }
   0x1   :  { %4741 = sst [smem:[#allocation52_spill]] %s4703_s0 }
   0x2   :  { %4742 = sst [smem:[#allocation53_spill]] %s4704_s1 }
   0x3   :  { %4743 = sst [smem:[#allocation54_spill]] %s4705_s2 }
   0x4   :  { %4744 = sst [smem:[#allocation55_spill]] %s4706_s3 }
   0x5   :  { %4745 = sst [smem:[#allocation56_spill]] %s4707_s4 }
   0x6   :  { %4746 = sst [smem:[#allocation57_spill]] %s4708_s5 }
   0x7   :  { %4747 = sst [smem:[#allocation58_spill]] %s4709_s6 }
   0x8   :  { %4748 = sst [smem:[#allocation59_spill]] %s4710_s7 }
   0x9   :  { %4749 = sst [smem:[#allocation60_spill]] %s4711_s8 }
   0xa   :  { %4750 = sst [smem:[#allocation61_spill]] %s4712_s9 }
   0xb   :  { %4751 = sst [smem:[#allocation62_spill]] %s4713_s10 }
   0xc   :  { %4752 = sst [smem:[#allocation63_spill]] %s4714_s11 }
   0xd   :  { %4753 = sst [smem:[#allocation64_spill]] %s4715_s12 }
   0xe   :  { %4754 = sst [smem:[#allocation65_spill]] %s4716_s13 }
   0xf   :  { %4755 = sst [smem:[#allocation66_spill]] %s4717_s14 }
  0x10   :  { %4756 = sst [smem:[#allocation67_spill]] %s4718_s15 }
  0x11   :  { %4757 = sst [smem:[#allocation68_spill]] %s4719_s16 }
  0x12   :  { %4758 = sst [smem:[#allocation69_spill]] %s4720_s17 }
  0x13   :  { %4759 = sst [smem:[#allocation70_spill]] %s4721_s18 }
  0x14   :  { %4760 = sst [smem:[#allocation71_spill]] %s4722_s19 }
  0x15   :  { %4761 = sst [smem:[#allocation72_spill]] %s4723_s20 }
  0x16   :  { %4762 = sst [smem:[#allocation73_spill]] %s4724_s21 }
  0x17   :  { %4763 = sst [smem:[#allocation74_spill]] %s4725_s22 }
  0x18   :  { %4764 = sst [smem:[#allocation75_spill]] %s4726_s23 }
  0x19   :  { %4765 = sst [smem:[#allocation76_spill]] %s4727_s24 }
  0x1a   :  { %4766 = sst [smem:[#allocation77_spill]] %s4728_s25 }
  0x1b   :  { %4767 = sst [smem:[#allocation78_spill]] %s4729_s26 }
  0x1c   :  { %4768 = sst [smem:[#allocation79_spill]] %s4730_s27 }
  0x1d   :  { %4769 = sst [smem:[#allocation80_spill]] %s4731_s28 }
  0x1e   :  { %33 = vsyncpa [#allocation3], 0 }
  0x1f   :  { %35 = vsyncpa [#allocation3 + $0x1], 0 }
  0x20   :  { %36 = vsyncpa [#allocation6], 0 }
  0x21   :  { %38 = vsyncpa [#allocation6 + $0x1], 0 }
  0x22   :  { %39 = vsyncpa [#allocation9], 0 }
  0x23   :  { %40 = vsyncpa [#allocation12], 0 }
  0x24   :  { %41 = vsyncpa [#allocation15], 0 }
  0x25   :  { %42 = vsyncpa [#allocation18], 0 }
  0x26   :  { %43 = vsyncpa [#allocation21], 0 }
  0x27   :  { %44 = vsyncpa [#allocation24], 0 }
  0x28   :  { %45 = vsyncpa [#allocation27], 0 }
  0x29   :  { %46 = vsyncpa [#allocation30], 0 }
  0x2a   :  { %47 = vsyncpa [#allocation4], 0 }
  0x2b   :  { %49 = vsyncpa [#allocation4 + $0x1], 0  ;;  %s4153_s8 = smov 0   ;;  %s4155_s5 = smov 0  }
  0x2c   :  { %s4157_s9 = smov 0   ;;  %s4159_s30 = smov 0  }
  0x2d   :  { %s4161_s3 = smov 0   ;;  %s4163_s6 = smov 0  }
  0x2e   :  { %s4165_s10 = smov 0   ;;  %s4167_s0 = smov 0  }
  0x2f   :  { %s4169_s11 = smov 0   ;;  %s4171_s29 = smov 0  }
  0x30   :  { %s4173_s2 = smov 0  }
  0x31 LB: > { %4770 = sst [smem:[#allocation45_spill]] %s3937_s8  ;;  %s4209_s7 = sadd.s32 4294967295, %s3977_s2   ;;  %s3977_s2 = sphi %s4173_s2, %s55_s2   ;;  %s3973_s29 = sphi %s4171_s29, %s4834_s29   ;;  %s3969_s11 = sphi %s4169_s11, %s4833_s11   ;;  %s3965_s0 = sphi %s4167_s0, %s4832_s0   ;;  %s3961_s10 = sphi %s4165_s10, %s4831_s10   ;;  %s3957_s6 = sphi %s4163_s6, %s4830_s6   ;;  %s3953_s3 = sphi %s4161_s3, %s4829_s3   ;;  %s3949_s30 = sphi %s4159_s30, %s4828_s30   ;;  %s3945_s9 = sphi %s4157_s9, %s4827_s9   ;;  %s3941_s5 = sphi %s4155_s5, %s4824_s5   ;;  %s3937_s8 = sphi %s4153_s8, %s4826_s8  }
  0x32   : > { %4771 = sst [smem:[#allocation46_spill]] %s3941_s5  ;;  %p2686_p0 = scmp.ge.s32.totalorder %s3977_s2, 1 }
  0x33   : > { %4772 = sst [smem:[#allocation47_spill]] %s3945_s9  ;;  %p88_p1 = scmp.eq.s32.totalorder %s4209_s7, 0 }
  0x34   : > { %4773 = sst [smem:[#allocation48_spill]] %s3961_s10  ;;  %p698_p2 = scmp.lt.s32.totalorder %s3977_s2, 5 }
  0x35   : > { %4774 = sst [smem:[#allocation49_spill]] %s3965_s0  ;;  %s3979_s0 = smov [#allocation7]  }
  0x36   : > { %4775 = sst [smem:[#allocation50_spill]] %s4209_s7  ;;  %p4217_p3 = pnand %p2686_p0, %p698_p2 }
  0x37   : > { %s4776_s4 = sld [smem:[#allocation55_spill]]  ;;  %s715_s25 = sshll.u32 %s3979_s0, 4  ;;  %s716_s25 = int_to_ptr.vmem [resolvable:$true] %s715_s25 }
  0x38   : > { %s4777_s27 = scalar_select %p4217_p3, 1, 0 }
  0x39   : > { %p2929_p4 = pneg %p4217_p3  ;;  %s4779_s21 = sld [smem:[#allocation56_spill]] }
  0x3a   : > { %4778 = sst [smem:[#allocation51_spill]] %s4777_s27  ;;  %s3980_s12 = smov [#allocation8]  }
  0x3b   : > { %p4228_p5 = pnand %p2929_p4, %p88_p1  ;;  %s726_s1 = sshll.u32 %s3980_s12, 4  ;;  %s727_s1 = int_to_ptr.vmem [resolvable:$true] %s726_s1 }
  0x3c   : > { %s3981_s0 = smov 64   ;;  %s4781_s23 = sld [smem:[#allocation58_spill]] }
  0x3d   : > { %s713_s28 = sshll.u32 %s4776_s4, 4  ;;  %s3982_s4 = smov 4   ;;  %s714_s28 = int_to_ptr.hbm [resolvable:$true] %s713_s28 }
  0x3e   : > { %2932 = dma.hbm_to_vmem [thread:$0]  (!%p4228_p5), %s714_s28, 16, %s716_s25, [#allocation6]  }
  0x3f   : > { %s724_s20 = sshll.u32 %s4779_s21, 4  ;;  %s3983_s10 = smov [#allocation11]   ;;  %s725_s20 = int_to_ptr.hbm [resolvable:$true] %s724_s20 }
  0x40   : > { %2935 = dma.hbm_to_vmem [thread:$0]  (!%p4228_p5), %s725_s20, 256, %s727_s1, [#allocation9], %s3981_s0, %s3981_s0, %s3982_s4  }
  0x41   : > { %s754_s27 = sshll.u32 %s3983_s10, 4  ;;  %s4782_s28 = sld [smem:[#allocation60_spill]]  ;;  %s755_s27 = int_to_ptr.vmem [resolvable:$true] %s754_s27 }
  0x42   : > { %s752_s18 = sshll.u32 %s4781_s23, 4  ;;  %s3984_s20 = smov [#allocation14]   ;;  %s753_s18 = int_to_ptr.hbm [resolvable:$true] %s752_s18 }
  0x43   : > { %2941 = dma.hbm_to_vmem [thread:$0]  (!%p4228_p5), %s753_s18, 256, %s755_s27, [#allocation12], %s3981_s0, %s3981_s0, %s3982_s4  }
  0x44   : > { %s783_s1 = sshll.u32 %s3984_s20, 4  ;;  %s4783_s22 = sld [smem:[#allocation62_spill]]  ;;  %s784_s1 = int_to_ptr.vmem [resolvable:$true] %s783_s1 }
  0x45   : > { %s4784_s25 = sld [smem:[#allocation64_spill]]  ;;  %s3985_s9 = smov [#allocation17]  }
  0x46   : > { %s807_s7 = sshll.u32 %s3985_s9, 4  ;;  %s3986_s18 = smov [#allocation20]   ;;  %s808_s7 = int_to_ptr.vmem [resolvable:$true] %s807_s7 }
  0x47   : > { %s781_s8 = sshll.u32 %s4782_s28, 4  ;;  %s831_s27 = sshll.u32 %s3986_s18, 4  ;;  %s782_s8 = int_to_ptr.hbm [resolvable:$true] %s781_s8  ;;  %s832_s27 = int_to_ptr.vmem [resolvable:$true] %s831_s27 }
  0x48   : > { %2947 = dma.hbm_to_vmem [thread:$0]  (!%p4228_p5), %s782_s8, 16, %s784_s1, [#allocation15]  }
  0x49   : > { %s4785_s14 = sld [smem:[#allocation66_spill]]  ;;  %s3987_s9 = smov [#allocation23]  }
  0x4a   : > { %s805_s23 = sshll.u32 %s4783_s22, 4  ;;  %s4786_s16 = sld [smem:[#allocation68_spill]]  ;;  %s806_s23 = int_to_ptr.hbm [resolvable:$true] %s805_s23 }
  0x4b   : > { %s829_s28 = sshll.u32 %s4784_s25, 4  ;;  %s855_s10 = sshll.u32 %s3987_s9, 4  ;;  %s830_s28 = int_to_ptr.hbm [resolvable:$true] %s829_s28  ;;  %s856_s10 = int_to_ptr.vmem [resolvable:$true] %s855_s10 }
  0x4c   : > { %2953 = dma.hbm_to_vmem [thread:$0]  (!%p4228_p5), %s806_s23, 16, %s808_s7, [#allocation18]  }
  0x4d   : > { %2959 = dma.hbm_to_vmem [thread:$0]  (!%p4228_p5), %s830_s28, 16, %s832_s27, [#allocation21]  }
  0x4e   : > { %s3988_s7 = smov [#allocation26]   ;;  %s4787_s24 = sld [smem:[#allocation76_spill]] }
  0x4f   : > { %s853_s21 = sshll.u32 %s4785_s14, 4  ;;  %s880_s23 = sshll.u32 %s3988_s7, 4  ;;  %s854_s21 = int_to_ptr.hbm [resolvable:$true] %s853_s21  ;;  %s881_s23 = int_to_ptr.vmem [resolvable:$true] %s880_s23 }
  0x50   : > { %s878_s22 = sshll.u32 %s4786_s16, 4  ;;  %s4788_s5 = sld [smem:[#allocation57_spill]]  ;;  %s879_s22 = int_to_ptr.hbm [resolvable:$true] %s878_s22 }
  0x51   : > { %2965 = dma.hbm_to_vmem [thread:$0]  (!%p4228_p5), %s854_s21, 16, %s856_s10, [#allocation24]  }
  0x52   : > { %2971 = dma.hbm_to_vmem [thread:$0]  (!%p4228_p5), %s879_s22, 128, %s881_s23, [#allocation27], %s3981_s0, %s3981_s0, %s3982_s4  }
  0x53   : > { %s3989_s8 = smov [#allocation29]   ;;  %s3990_s1 = smov [#allocation10]  }
  0x54   : > { %s924_s18 = sshll.u32 %s4787_s24, 4  ;;  %s926_s21 = sshll.u32 %s3989_s8, 4  ;;  %s925_s18 = int_to_ptr.hbm [resolvable:$true] %s924_s18  ;;  %s927_s21 = int_to_ptr.vmem [resolvable:$true] %s926_s21 }
  0x55   : > { %2977 = dma.hbm_to_vmem [thread:$0]  (!%p4228_p5), %s925_s18, 256, %s927_s21, [#allocation30], %s3981_s0, %s3981_s0, %s3982_s4  }
  0x56   : > { %s738_s20 = sshll.u32 %s4788_s5, 4  ;;  %s740_s9 = sshll.u32 %s3990_s1, 4  ;;  %s739_s20 = int_to_ptr.hbm [resolvable:$true] %s738_s20  ;;  %s741_s9 = int_to_ptr.vmem [resolvable:$true] %s740_s9 }
  0x57   : > { %s4789_s12 = sld [smem:[#allocation59_spill]]  ;;  %s3991_s5 = smov [#allocation13]  }
  0x58   : > { %2938 = dma.hbm_to_vmem [thread:$0]  (!%p4228_p5), %s739_s20, 256, %s741_s9, [#allocation9], %s3981_s0, %s3981_s0, %s3982_s4  }
  0x59   : > { %s4790_s28 = sld [smem:[#allocation61_spill]]  ;;  %s768_s18 = sshll.u32 %s3991_s5, 4  ;;  %s769_s18 = int_to_ptr.vmem [resolvable:$true] %s768_s18 }
  0x5a   : > { %s3992_s8 = smov [#allocation16]   ;;  %s4791_s7 = sld [smem:[#allocation63_spill]] }
  0x5b   : > { %s795_s21 = sshll.u32 %s3992_s8, 4  ;;  %s4792_s13 = sld [smem:[#allocation65_spill]]  ;;  %s796_s21 = int_to_ptr.vmem [resolvable:$true] %s795_s21 }
  0x5c   : > { %s3993_s25 = smov [#allocation19]   ;;  %s4793_s15 = sld [smem:[#allocation67_spill]] }
  0x5d   : > { %s766_s22 = sshll.u32 %s4789_s12, 4  ;;  %s4794_s17 = sld [smem:[#allocation69_spill]]  ;;  %s767_s22 = int_to_ptr.hbm [resolvable:$true] %s766_s22 }
  0x5e   : > { %2944 = dma.hbm_to_vmem [thread:$0]  (!%p4228_p5), %s767_s22, 256, %s769_s18, [#allocation12], %s3981_s0, %s3981_s0, %s3982_s4  }
  0x5f   : > { %s793_s27 = sshll.u32 %s4790_s28, 4  ;;  %s819_s28 = sshll.u32 %s3993_s25, 4  ;;  %s794_s27 = int_to_ptr.hbm [resolvable:$true] %s793_s27  ;;  %s820_s28 = int_to_ptr.vmem [resolvable:$true] %s819_s28 }
  0x60   : > { %s817_s20 = sshll.u32 %s4791_s7, 4  ;;  %s3994_s22 = smov [#allocation22]   ;;  %s818_s20 = int_to_ptr.hbm [resolvable:$true] %s817_s20 }
  0x61   : > { %2950 = dma.hbm_to_vmem [thread:$0]  (!%p4228_p5), %s794_s27, 16, %s796_s21, [#allocation15]  }
  0x62   : > { %s841_s23 = sshll.u32 %s4792_s13, 4  ;;  %s843_s5 = sshll.u32 %s3994_s22, 4  ;;  %s842_s23 = int_to_ptr.hbm [resolvable:$true] %s841_s23  ;;  %s844_s5 = int_to_ptr.vmem [resolvable:$true] %s843_s5 }
  0x63   : > { %2956 = dma.hbm_to_vmem [thread:$0]  (!%p4228_p5), %s818_s20, 16, %s820_s28, [#allocation18]  }
  0x64   : > { %s864_s1 = sshll.u32 %s4793_s15, 4  ;;  %s892_s10 = sshll.u32 %s4794_s17, 4  ;;  %s865_s1 = int_to_ptr.hbm [resolvable:$true] %s864_s1  ;;  %s893_s10 = int_to_ptr.hbm [resolvable:$true] %s892_s10 }
  0x65   : > { %2962 = dma.hbm_to_vmem [thread:$0]  (!%p4228_p5), %s842_s23, 16, %s844_s5, [#allocation21]  }
  0x66   : > { %s3995_s7 = smov [#allocation25]   ;;  %s3996_s9 = smov [#allocation28]  }
  0x67   : > { %s866_s20 = sshll.u32 %s3995_s7, 4  ;;  %s894_s12 = sshll.u32 %s3996_s9, 4  ;;  %s867_s20 = int_to_ptr.vmem [resolvable:$true] %s866_s20  ;;  %s895_s12 = int_to_ptr.vmem [resolvable:$true] %s894_s12 }
  0x68   : > { %2968 = dma.hbm_to_vmem [thread:$0]  (!%p4228_p5), %s865_s1, 256, %s867_s20, [#allocation24], %s3981_s0, %s3981_s0, %s3982_s4  }
  0x69   : > { %s4795_s26 = sld [smem:[#allocation78_spill]]  ;;  %s3997_s22 = smov [#allocation31]  }
  0x6a   : > { %2974 = dma.hbm_to_vmem [thread:$0]  (!%p4228_p5), %s893_s10, 128, %s895_s12, [#allocation27], %s3981_s0, %s3981_s0, %s3982_s4  }
  0x6b   : > { %s943_s5 = sshll.u32 %s3997_s22, 4  ;;  %s4796_s18 = sld [smem:[#allocation50_spill]]  ;;  %s944_s5 = int_to_ptr.vmem [resolvable:$true] %s943_s5 }
  0x6c   : > { %s4797_s8 = sld [smem:[#allocation47_spill]]  ;;  %s2685_s1 = sadd.s32 4294967294, %s3977_s2  }
  0x6d   : > { %s4798_s27 = sld [smem:[#allocation46_spill]]  ;;  %s64_s21 = sadd.s32 1, %s3969_s11 }
  0x6e   : > { %s67_s7 = sadd.s32 1, %s3973_s29  ;;  %p65_p6 = scmp.ge.s32.totalorder %s64_s21, 2 }
  0x6f   : > { %s941_s28 = sshll.u32 %s4795_s26, 4  ;;  %s4799_s10 = sld [smem:[#allocation45_spill]]  ;;  %s942_s28 = int_to_ptr.hbm [resolvable:$true] %s941_s28 }
  0x70   : > { %2980 = dma.hbm_to_vmem [thread:$0]  (!%p4228_p5), %s942_s28, 256, %s944_s5, [#allocation30], %s3981_s0, %s3981_s0, %s3982_s4  }
  0x71   : > { %s74_s20 = sadd.s32 1, %s3957_s6  ;;  %p81_p7 = scmp.ne.s32.totalorder %s3957_s6, %s3953_s3 }
  0x72   : > { %p82_p8 = scmp.eq.s32.totalorder %s3977_s2, 0  ;;  %s4836_s21 = smov (%p65_p6, %s64_s21), 0 }
  0x73   : > { %s4838_s7 = smov (!%p65_p6, %s67_s7), %s3973_s29  ;;  %p87_p10 = scmp.ne.s32.totalorder %s3953_s3, %s3949_s30 }
  0x74   : > { %p4348_p9 = por %p82_p8, %p81_p7  ;;  %p69_p11 = scmp.ge.s32.totalorder %s4838_s7, 2 }
  0x75   : > { %s670_s0 = ssub.s32 %s3969_s11, %s4836_s21  ;;  %p4358_p12 = por %p88_p1, %p87_p10 }
  0x76   : > { %s674_s9 = sadd.s32 1, %s4797_s8  ;;  %s4840_s7 = smov (%p69_p11, %s4838_s7), 0 }
  0x77   : > { %p684_p13 = scmp.ne.s32.totalorder %s4797_s8, %s4798_s27  ;;  %p685_p0 = scmp.eq.s32.totalorder %s4796_s18, 3 }
  0x78   : > { %s71_s12 = ssub.s32 %s3973_s29, %s4840_s7  ;;  %p690_p2 = scmp.ne.s32.totalorder %s4798_s27, %s4799_s10 }
  0x79   : > { %p72_p4 = scmp.eq.s32.totalorder %s71_s12, 0  ;;  %s671_s30 = sor.u32 %s670_s0, %s71_s12 }
  0x7a   : > { %p672_p5 = scmp.eq.s32.totalorder %s671_s30, 0  ;;  %p4372_p6 = por %p685_p0, %p684_p13 }
  0x7b   : > { %s4377_s25 = scalar_select %p72_p4, %s3957_s6, %s74_s20  }
  0x7c   : > { %s4842_s8 = smov (!%p672_p5, %s4797_s8), %s674_s9  ;;  %p691_p7 = scmp.eq.s32.totalorder %s2685_s1, 3 }
  0x7d   : > { %p3009_p8 = scmp.lt.s32.totalorder %s3977_s2, 4  ;;  %s960_s28 = sand.u32 1, %s3957_s6  }
  0x7e   : > { %s2836_s22 = sshll.u32 %s3973_s29, 4  ;;  %p4385_p10 = por %p691_p7, %p690_p2 }
  0x7f   : > { %s2705_s18 = sshll.u32 %s960_s28, 4  ;;  %s4804_s0 = sld [smem:[#allocation52_spill]] }
  0x80   : > { %s964_s20 = scalar_lea.vmem [#allocation2], %s2705_s18  ;;  %p4394_p11 = pnand %p3009_p8, %p4348_p9 }
  0x81   : > { %s972_s13 = sshll.u32 %s964_s20, 4  ;;  %s982_s9 = sand.u32 1, %s3977_s2   ;;  %s973_s13 = int_to_ptr.vmem [resolvable:$true] %s972_s13 }
  0x82   : > { %s961_s14 = scalar_lea.sflag [#allocation3], %s960_s28  ;;  %s3998_s15 = smov 128  }
  0x83   : > { %s3999_s16 = smov 8   ;;  %s2708_s27 = sshll.u32 %s960_s28, 3 }
  0x84   : > { %s4806_s18 = sld [smem:[#allocation53_spill]]  ;;  %s986_s20 = scalar_lea.vmem [#allocation5], %s2708_s27 }
  0x85   : > { %s969_s12 = scalar_lea.hbm %s4804_s0, %s2836_s22  ;;  %s2709_s22 = sshll.u32 %s3973_s29, 3 }
  0x86   : > { %s970_s30 = sshll.u32 %s969_s12, 4  ;;  %s994_s19 = sshll.u32 %s986_s20, 4  ;;  %s971_s30 = int_to_ptr.hbm [resolvable:$true] %s970_s30  ;;  %s995_s19 = int_to_ptr.vmem [resolvable:$true] %s994_s19 }
  0x87   : > { %2984 = dma.hbm_to_vmem [thread:$0]  (!%p4394_p11), %s971_s30, 256, %s973_s13, %s961_s14, %s3998_s15, %s3998_s15, %s3999_s16  }
  0x88   : > { %s983_s24 = scalar_lea.sflag [#allocation6], %s982_s9  ;;  %1003 = sbr.rel (%p4217_p3) target bundleno = 3936 (0xf60), region = 132 }
  0x89   : > { %s1005_s13 = sand.u32 (!%p4217_p3), 1, %s3953_s3  }
  0x8a   : > { %s990_s12 = scalar_lea.hbm %s4806_s18, %s2709_s22  ;;  %s2711_s14 = sshll.u32 (!%p4217_p3), %s1005_s13, 4 }
  0x8b   : > { %s992_s17 = sshll.u32 %s990_s12, 4  ;;  %s1006_s15 = scalar_lea.sflag (!%p4217_p3), [#allocation3], %s1005_s13  ;;  %s993_s17 = int_to_ptr.hbm [resolvable:$true] %s992_s17 }
  0x8c   : > { %2987 = dma.hbm_to_vmem [thread:$0]  (!%p4394_p11), %s993_s17, 128, %s995_s19, %s983_s24  }
  0x8d   : > { %s4410_s16 = scalar_lea.vmem [#allocation2], %s2711_s14 }
  0x8e   : > { %3888 = dma.done.wait (%p4358_p12), %s1006_s15, 256  }
  0x8f   : > { %3890 = vsyncadd (%p4358_p12), %s1006_s15, 4294967040  ;;  %s4808_s28 = sld [smem:[#allocation50_spill]]  ;;  %s2712_s1 = sshll.u32 %s1005_s13, 3 }
  0x90   : > { %s4417_s24 = scalar_lea.vmem [#allocation5], %s2712_s1 }
  0x95   : > { %s1015_s30 = sand.u32 1, %s4808_s28  }
  0x96   : > { %s1016_s17 = scalar_lea.sflag [#allocation6], %s1015_s30 }
  0x97   : > { %3892 = dma.done.wait (%p4358_p12), %s1016_s17, 128  }
  0x98   : > { %3894 = vsyncadd (%p4358_p12), %s1016_s17, 4294967168 }
  0x99   : > { %3896 = dma.done.wait (%p88_p1), [#allocation6], 16  }
  0x9a   : > { %3898 = vsyncadd (%p88_p1), [#allocation6], 4294967280 }
  0x9b   : > { %3900 = dma.done.wait (%p88_p1), [#allocation9], 512  }
  0x9c   : > { %3902 = vsyncadd (%p88_p1), [#allocation9], 4294966784 }
  0x9d   : > { %3904 = dma.done.wait (%p88_p1), [#allocation12], 512  }
  0x9e   : > { %3906 = vsyncadd (%p88_p1), [#allocation12], 4294966784 }
  0x9f   : > { %3908 = dma.done.wait (%p88_p1), [#allocation15], 32  }
  0xa0   : > { %3910 = vsyncadd (%p88_p1), [#allocation15], 4294967264 }
  0xa1   : > { %3912 = dma.done.wait (%p88_p1), [#allocation18], 32  }
  0xa2   : > { %3914 = vsyncadd (%p88_p1), [#allocation18], 4294967264 }
  0xa3   : > { %3916 = dma.done.wait (%p88_p1), [#allocation21], 32  }
  0xa4   : > { %3918 = vsyncadd (%p88_p1), [#allocation21], 4294967264 }
  0xa5   : > { %3920 = dma.done.wait (%p88_p1), [#allocation24], 272  }
  0xa6   : > { %3922 = vsyncadd (%p88_p1), [#allocation24], 4294967024 }
  0xa7   : > { %3924 = dma.done.wait (%p88_p1), [#allocation27], 256  }
  0xa8   : > { %3926 = vsyncadd (%p88_p1), [#allocation27], 4294967040 }
  0xa9   : > { %3928 = dma.done.wait (%p88_p1), [#allocation30], 512  }
  0xaa   : > { %3930 = vsyncadd (%p88_p1), [#allocation30], 4294966784  ;;  %s4809_s26 = sld [smem:[#allocation48_spill]]  ;;  %vm1192_vm0 = vcmask 261120   ;;  %v1185_v0 = vld [vmem:[%s4410_s16] sm:$0xff]  ;;  %v1186_v4 = vld [vmem:[%s4410_s16 + $0x8] sm:$0xff] }
  0xab   : > { %v1193_v2 = vsel %vm1192_vm0, %v1185_v0, 0.0  ;;  %v1196_v5 = vsel %vm1192_vm0, %v1186_v4, 0.0  ;;  %v4000_v6 = vmov 32.0   ;;  %v2840_v28 = vld [vmem:[#allocation10 + $0x8] sm:$0xff]  ;;  %v2842_v29 = vld [vmem:[#allocation11 + $0x8] sm:$0xff]  ;;  %v2839_v32 = vld [vmem:[#allocation10] sm:$0xff] }
  0xac   : > { %1194 = vadd.xlane.f32.xlu0 %v1193_v2  ;;  %3191 = vrcp.f32 %v4000_v6  ;;  %1346 = vmatpush.bf16.msra.mxu1 %v2840_v28  ;;  %v2841_v33 = vld [vmem:[#allocation11] sm:$0xff]  ;;  %v2838_v35 = vld [vmem:[#allocation8 + $0x8] sm:$0xff]  ;;  %s4810_s10 = sld [smem:[#allocation54_spill]]  ;;  %s4001_s0 = smov 112   ;;  %vm1455_vm11 = vcmask 64512   ;;  %vm1547_vm12 = vcmask 130048  }
  0xad   : > { %1372 = vmatpush.bf16.msra.mxu2 %v2842_v29  ;;  %1317 = vmatpush.bf16.msra.mxu0 %v2838_v35  ;;  %v2837_v37 = vld [vmem:[#allocation8] sm:$0xff]  ;;  %s4002_s18 = smov 120   ;;  %s4003_s12 = smov 104   ;;  %vm1698_vm13 = vcmask 195584  }
  0xae   : > { %s4004_s20 = smov 16   ;;  %s4005_s19 = smov 8  }
  0xaf   : > { %s4006_s13 = smov 24   ;;  %s4813_s27 = sld [smem:[#allocation72_spill]] }
  0xb0   : > { %s2731_s4 = sshll.u32 %s4809_s26, 3  ;;  %1347 = vmatpush.bf16.msra.mxu1 %v2839_v32  ;;  %s4816_s14 = sld [smem:[#allocation75_spill]] }
  0xb1   : > { %s1187_s9 = scalar_lea.vmem %s4410_s16, %s2731_s4 [#allocation2]  ;;  %1373 = vmatpush.bf16.msra.mxu2 %v2841_v33  ;;  %1318 = vmatpush.bf16.msra.mxu0 %v2837_v37  ;;  %s4811_s16 = sld [smem:[#allocation70_spill]] }
  0xb2   : > { %v4462_v1 = vld [vmem:[%s1187_s9] sm:$0xff]  ;;  %v3192_v7 = vpop.eup %3191  ;;  %s4817_s30 = sld [smem:[#allocation77_spill]] }
  0xb3   : > { %v1254_v3 = vsel %vm1192_vm0, %v4462_v1, 0.0  ;;  %v1200_v8 = vmul.f32 32.0, %v3192_v7  ;;  %vm1204_vm1 = vweird.f32 %v3192_v7  ;;  %v3175_v57 = vld [vmem:[%s4810_s10] ss:$0 sm:$0xff]  ;;  %s4818_s1 = sld [smem:[#allocation49_spill]] }
  0xb4   : > { %1255 = vadd.xlane.f32.xlu1 %v1254_v3  ;;  %1197 = vadd.xlane.f32.xlu0 %v1196_v5  ;;  %s4819_s17 = sld [smem:[#allocation46_spill]] }
  0xb5   : > { %v1201_v9 = vsub.f32 1.0, %v1200_v8 }
  0xb7   : > { %v1202_v10 = vmul.f32 %v3192_v7, %v1201_v9 }
  0xb9   : > { %v1203_v11 = vadd.f32 %v3192_v7, %v1202_v10 }
  0xba   : > { %s1180_s4 = sand.u32 1, %s4819_s17  }
  0xbb   : > { %v4469_v12 = vsel %vm1204_vm1, %v3192_v7, %v1203_v11 }
 0x11f   : > { %v1195_v13 = vpop.xlane.xlu0 %1194 }
 0x120   : > { %v1206_v14 = vmul.f32 %v4469_v12, %v1195_v13 }
 0x122   : > { %v1208_v15 = vsub.f32 %v1185_v0, %v1206_v14  ;;  %v3176_v0 = vld [vmem:[#allocation7] ss:$0 sm:$0xff] }
 0x124   : > { %v1210_v16 = vmul.f32 %v1208_v15, %v1208_v15 }
 0x126   : > { %v1212_v18 = vsel %vm1192_vm0, %v1210_v16, 0.0 }
 0x127   : > { %v1256_v17 = vpop.xlane.xlu1 %1255  ;;  %1213 = vadd.xlane.f32.xlu1 %v1212_v18  ;;  %v1198_v19 = vpop.xlane.xlu0 %1197 }
 0x128   : > { %v1207_v20 = vmul.f32 %v4469_v12, %v1198_v19  ;;  %v1257_v21 = vmul.f32 %v1256_v17, %v4469_v12 }
 0x12a   : > { %v1209_v22 = vsub.f32 %v1186_v4, %v1207_v20  ;;  %v4476_v23 = vsub.f32 %v4462_v1, %v1257_v21 }
 0x12c   : > { %v1211_v24 = vmul.f32 %v1209_v22, %v1209_v22  ;;  %v1259_v26 = vmul.f32 %v4476_v23, %v4476_v23 }
 0x12e   : > { %v1215_v25 = vsel %vm1192_vm0, %v1211_v24, 0.0  ;;  %v1260_v27 = vsel %vm1192_vm0, %v1259_v26, 0.0 }
 0x12f   : > { %1216 = vadd.xlane.f32.xlu2 %v1215_v25 }
 0x137   : > { %1261 = vadd.xlane.f32.xlu2 %v1260_v27 }
 0x19a   : > { %v1214_v30 = vpop.xlane.xlu1 %1213 }
 0x19b   : > { %v1218_v31 = vmul.f32 %v1214_v30, %v4469_v12 }
 0x19d   : > { %v1220_v34 = vadd.f32 1e-05, %v1218_v31 }
 0x19f   : > { %3193 = vrsqrt.f32 %v1220_v34  ;;  %vm1228_vm3 = vweird.f32 %v1220_v34 }
 0x1a2   : > { %v1217_v36 = vpop.xlane.xlu2 %1216 }
 0x1a3   : > { %v1219_v38 = vmul.f32 %v1217_v36, %v4469_v12 }
 0x1a5   : > { %v3194_v39 = vpop.eup %3193  ;;  %v1221_v40 = vadd.f32 1e-05, %v1219_v38 }
 0x1a6   : > { %v1223_v41 = vmul.f32 %v3194_v39, %v1220_v34  ;;  %vm1229_vm2 = vweird.f32 %v3194_v39 }
 0x1a7   : > { %3195 = vrsqrt.f32 %v1221_v40  ;;  %vm1230_vm4 = vmor %vm1228_vm3, %vm1229_vm2  ;;  %vm1238_vm6 = vweird.f32 %v1221_v40 }
 0x1a8   : > { %v1224_v42 = vmul.f32 %v3194_v39, %v1223_v41 }
 0x1aa   : > { %v1225_v43 = vmul.f32 0.5, %v1224_v42  ;;  %v1262_v44 = vpop.xlane.xlu2 %1261 }
 0x1ab   : > { %v1263_v45 = vmul.f32 %v1262_v44, %v4469_v12 }
 0x1ac   : > { %v1226_v46 = vsub.f32 1.5, %v1225_v43 }
 0x1ad   : > { %v3196_v47 = vpop.eup %3195  ;;  %v1264_v48 = vadd.f32 1e-05, %v1263_v45 }
 0x1ae   : > { %v1227_v49 = vmul.f32 %v3194_v39, %v1226_v46  ;;  %v1233_v50 = vmul.f32 %v3196_v47, %v1221_v40  ;;  %vm1239_vm5 = vweird.f32 %v3196_v47 }
 0x1af   : > { %3197 = vrsqrt.f32 %v1264_v48  ;;  %vm1240_vm7 = vmor %vm1238_vm6, %vm1239_vm5  ;;  %vm1271_vm8 = vweird.f32 %v1264_v48 }
 0x1b0   : > { %v1234_v51 = vmul.f32 %v3196_v47, %v1233_v50  ;;  %v1231_v52 = vsel %vm1230_vm4, %v3194_v39, %v1227_v49 }
 0x1b1   : > { %v1242_v56 = vmul.f32 %v1231_v52, %v1208_v15 }
 0x1b2   : > { %v1235_v53 = vmul.f32 0.5, %v1234_v51 }
 0x1b3   : > { %v1247_v63 = vmul.f32 %v3175_v57, %v1242_v56 }
 0x1b4   : > { %v1236_v54 = vsub.f32 1.5, %v1235_v53 }
 0x1b5   : > { %v3198_v55 = vpop.eup %3197  ;;  %v1252_v5 = vadd.f32 %v3176_v0, %v1247_v63 }
 0x1b6   : > { %v1237_v58 = vmul.f32 %v3196_v47, %v1236_v54  ;;  %v1266_v59 = vmul.f32 %v3198_v55, %v1264_v48  ;;  %vm1272_vm9 = vweird.f32 %v3198_v55 }
 0x1b7   : > { %vm1273_vm10 = vmor %vm1271_vm8, %vm1272_vm9  ;;  %vm2090_vm9 = vcmask 1043456  }
 0x1b8   : > { %v1241_v60 = vsel %vm1240_vm7, %v3196_v47, %v1237_v58  ;;  %v1267_v61 = vmul.f32 %v3198_v55, %v1266_v59 }
 0x1b9   : > { %v1243_v62 = vmul.f32 %v1241_v60, %v1209_v22 }
 0x1ba   : > { %v1268_v2 = vmul.f32 0.5, %v1267_v61 }
 0x1bb   : > { %v1248_v3 = vmul.f32 %v3175_v57, %v1243_v62 }
 0x1bc   : > { %v1269_v4 = vsub.f32 1.5, %v1268_v2 }
 0x1bd   : > { %v1253_v6 = vadd.f32 %v3176_v0, %v1248_v3 }
 0x1be   : > { %v1270_v7 = vmul.f32 %v3198_v55, %v1269_v4 }
 0x1bf   : > { %v1324_v8 = vpack.c.bf16 %v1253_v6, %v1252_v5 }
 0x1c0   : > { %v1274_v9 = vsel %vm1273_vm10, %v3198_v55, %v1270_v7 }
 0x1c1   : > { %2749 = vmatmul.msk.bf16.vlgmr.msra.gmra.mxu1 %vm1192_vm0, %v1324_v8  ;;  %2758 = vmatmul.msk.bf16.vlgmr.msra.gmra.mxu2 %vm1192_vm0, %v1324_v8  ;;  %v1275_v10 = vmul.f32 %v1274_v9, %v4476_v23 }
 0x1c3   : > { %v1276_v11 = vmul.f32 %v3175_v57, %v1275_v10 }
 0x1c5   : > { %v1277_v13 = vadd.f32 %v3176_v0, %v1276_v11 }
 0x1c7   : > { %v1295_v14 = vpack.c.bf16 %v1277_v13, %v1277_v13 }
 0x1c9   : > { %2740 = vmatmul.msk.bf16.vlgmr.msra.gmra.mxu0 %vm1192_vm0, %v1295_v14 }
 0x23e   : > { %v1349_v15 = vpop.f32.mrf.mxu1 }
 0x23f   : > { %v1414_v17 = vpack.c.bf16 %v1349_v15, %v1349_v15 }
 0x241   : > { %v1452_v22 = vunpack.c.l.b16 %v1414_v17 }
 0x244   : > { %v4492_v16 = vpop.f32.mrf.mxu2 }
 0x245   : > { %v1442_v25 = vpack.c.bf16 %v4492_v16, %v4492_v16 }
 0x246   : > { %v1320_v18 = vpop.f32.mrf.mxu0  ;;  %v1351_v19 = vpop.f32.mrf.mxu1 }
 0x247   : > { %v3155_v20 = vpack.i.bf16 %v1351_v19, %v1349_v15  ;;  %v1415_v21 = vpack.c.bf16 %v1351_v19, %v1351_v19  ;;  %v1598_v30 = vunpack.c.l.b16 %v1442_v25  ;;  %v1390_v33 = vpack.c.bf16 %v1320_v18, %v1320_v18 }
 0x249   : > { %3156 = vrot.lane.b32.xlu2 %v3155_v20, %s4001_s0  ;;  %3151 = vrot.lane.b32.xlu1 %v3155_v20, %s4002_s18  ;;  %v1453_v23 = vunpack.c.l.b16 %v1415_v21 }
 0x24a   : > { %3146 = vrot.lane.b32.xlu0 %v3155_v20, %s4003_s12 }
 0x24b   : > { %v1454_v24 = vpack.c.b16 %v1453_v23, %v1452_v22 }
 0x24c   : > { %v4499_v26 = vpop.f32.mrf.mxu2 }
 0x24d   : > { %v1460_v27 = vsel %vm1455_vm11, %v1454_v24, 0  ;;  %v1443_v28 = vpack.c.bf16 %v4499_v26, %v4499_v26 }
 0x24e   : > { %v1322_v29 = vpop.f32.mrf.mxu0  ;;  %1469 = vmatpush.bf16.xpose.msra.mxu3 %v1460_v27 }
 0x24f   : > { %v1599_v31 = vunpack.c.l.b16 %v1443_v28 }
 0x251   : > { %1384 = vrot.lane.b32.xlu1 %v1320_v18, %s4001_s0  ;;  %1381 = vrot.lane.b32.xlu2 %v1320_v18, %s4002_s18  ;;  %v1600_v32 = vpack.c.b16 %v1599_v31, %v1598_v30 }
 0x252   : > { %1387 = vrot.lane.b32.xlu0 %v1320_v18, %s4003_s12  ;;  %v3160_v18 = vpack.i.bf16 %v4499_v26, %v4492_v16 }
 0x255   : > { %2759 = vmatmul.msk.bf16.vlgmr.msra.gmra.mxu3 %vm1455_vm11, %v1390_v33 }
 0x256   : > { %1612 = vmatpush.bf16.msrb.mxu3 %v1600_v32 }
 0x2a3   : > { %v3157_v34 = vpop.permute.xlu2 %3156 }
 0x2a4   : > { %v3159_v35 = vunpack.i.h.bf16 %v3157_v34  ;;  %v3158_v36 = vunpack.i.l.bf16 %v3157_v34 }
 0x2a6   : > { %v1419_v37 = vpack.c.bf16 %v3159_v35, %v3159_v35  ;;  %v1418_v38 = vpack.c.bf16 %v3158_v36, %v3158_v36 }
 0x2a8   : > { %v1502_v39 = vunpack.c.l.b16 %v1419_v37  ;;  %v1501_v40 = vunpack.c.l.b16 %v1418_v38 }
 0x2aa   : > { %v1503_v41 = vpack.c.b16 %v1502_v39, %v1501_v40 }
 0x2ab   : > { %v1382_v63 = vpop.permute.xlu2 %1381 }
 0x2ac   : > { %v1508_v42 = vsel %vm1455_vm11, %v1503_v41, 0  ;;  %v1391_v2 = vpack.c.bf16 %v1382_v63, %v1382_v63 }
 0x2ad   : > { %1517 = vmatpush.bf16.xpose.msrb.mxu1 %v1508_v42 }
 0x2bb   : > { %v3152_v43 = vpop.permute.xlu1 %3151 }
 0x2bc   : > { %v3154_v44 = vunpack.i.h.bf16 %v3152_v43  ;;  %v3153_v45 = vunpack.i.l.bf16 %v3152_v43  ;;  %v3147_v46 = vpop.permute.xlu0 %3146 }
 0x2bd   : > { %v3149_v47 = vunpack.i.h.bf16 %v3147_v46  ;;  %v3148_v48 = vunpack.i.l.bf16 %v3147_v46 }
 0x2be   : > { %v1417_v49 = vpack.c.bf16 %v3154_v44, %v3154_v44  ;;  %v1416_v50 = vpack.c.bf16 %v3153_v45, %v3153_v45 }
 0x2bf   : > { %v1421_v51 = vpack.c.bf16 %v3149_v47, %v3149_v47  ;;  %v1420_v52 = vpack.c.bf16 %v3148_v48, %v3148_v48 }
 0x2c0   : > { %v1478_v53 = vunpack.c.l.b16 %v1417_v49  ;;  %v1477_v54 = vunpack.c.l.b16 %v1416_v50 }
 0x2c1   : > { %v1526_v55 = vunpack.c.l.b16 %v1421_v51  ;;  %v1525_v56 = vunpack.c.l.b16 %v1420_v52 }
 0x2c2   : > { %v1479_v57 = vpack.c.b16 %v1478_v53, %v1477_v54 }
 0x2c3   : > { %v1385_v58 = vpop.permute.xlu1 %1384  ;;  %v1527_v59 = vpack.c.b16 %v1526_v55, %v1525_v56 }
 0x2c4   : > { %v1392_v60 = vpack.c.bf16 %v1385_v58, %v1385_v58  ;;  %v1484_v61 = vsel %vm1455_vm11, %v1479_v57, 0  ;;  %v1388_v0 = vpop.permute.xlu0 %1387 }
 0x2c5   : > { %1493 = vmatpush.bf16.xpose.msrb.mxu0 %v1484_v61  ;;  %v1532_v62 = vsel %vm1455_vm11, %v1527_v59, 0  ;;  %v1393_v3 = vpack.c.bf16 %v1388_v0, %v1388_v0 }
 0x2c6   : > { %1541 = vmatpush.bf16.xpose.msrb.mxu2 %v1532_v62  ;;  %2761 = vmatmul.msk.bf16.vlgmr.msrb.gmra.mxu1 %vm1455_vm11, %v1392_v60 }
 0x2cc   : > { %2760 = vmatmul.msk.bf16.vlgmr.msrb.gmra.mxu0 %vm1455_vm11, %v1391_v2 }
 0x2cd   : > { %2762 = vmatmul.msk.bf16.vlgmr.msrb.gmra.mxu2 %vm1455_vm11, %v1393_v3 }
 0x2d8   : > { %v1471_v4 = vpop.f32.mrf.mxu3 }
 0x2d9   : > { %v1548_v17 = vsel %vm1547_vm12, %v1471_v4, -inf }
 0x2e0   : > { %v1473_v5 = vpop.f32.mrf.mxu3 }
 0x343   : > { %v1519_v6 = vpop.f32.mrf.mxu1 }
 0x344   : > { %v1554_v7 = vsel %vm1547_vm12, %v1519_v6, -inf }
 0x345   : > { %1555 = vmax.xlane.f32.xlu1 %v1554_v7 }
 0x349   : > { %v1495_v8 = vpop.f32.mrf.mxu0 }
 0x34a   : > { %v1551_v9 = vsel %vm1547_vm12, %v1495_v8, -inf }
 0x34b   : > { %1552 = vmax.xlane.f32.xlu2 %v1551_v9  ;;  %v1521_v10 = vpop.f32.mrf.mxu1 }
 0x350   : > { %v1543_v11 = vpop.f32.mrf.mxu2 }
 0x351   : > { %v1557_v13 = vsel %vm1547_vm12, %v1543_v11, -inf  ;;  %v1497_v14 = vpop.f32.mrf.mxu0 }
 0x352   : > { %1558 = vmax.xlane.f32.xlu0 %v1557_v13 }
 0x358   : > { %v1545_v15 = vpop.f32.mrf.mxu2 }
 0x35a   : > { %1549 = vmax.xlane.f32.xlu0 %v1548_v17 }
 0x35e   : > { %3161 = vrot.lane.b32.xlu1 %v3160_v18, %s4003_s12 }
 0x3b8   : > { %v1556_v19 = vpop.xlane.xlu1 %1555 }
 0x3b9   : > { %v1562_v20 = vsub.f32 %v1519_v6, %v1556_v19 }
 0x3bb   : > { %v1568_v21 = vmul.f32 1.442695, %v1562_v20 }
 0x3bd   : > { %3199 = vpow2.f32 %v1568_v21 }
 0x3be   : > { %v1553_v22 = vpop.xlane.xlu2 %1552 }
 0x3bf   : > { %v1561_v23 = vsub.f32 %v1495_v8, %v1553_v22 }
 0x3c1   : > { %v1566_v24 = vmul.f32 1.442695, %v1561_v23 }
 0x3c3   : > { %v3200_v25 = vpop.eup %3199  ;;  %3201 = vpow2.f32 %v1566_v24 }
 0x3c4   : > { %v1578_v27 = vsel %vm1547_vm12, %v3200_v25, 0.0 }
 0x3c5   : > { %v1559_v28 = vpop.xlane.xlu0 %1558  ;;  %1579 = vadd.xlane.f32.xlu2 %v1578_v27  ;;  %v2843_v27 = vld [vmem:[#allocation13] sm:$0xff] }
 0x3c6   : > { %v1563_v29 = vsub.f32 %v1543_v11, %v1559_v28 }
 0x3c8   : > { %v1570_v30 = vmul.f32 1.442695, %v1563_v29 }
 0x3c9   : > { %v3202_v31 = vpop.eup %3201 }
 0x3ca   : > { %3203 = vpow2.f32 %v1570_v30  ;;  %v1575_v16 = vsel %vm1547_vm12, %v3202_v31, 0.0 }
 0x3cb   : > { %1576 = vadd.xlane.f32.xlu0 %v1575_v16 }
 0x3cd   : > { %v1550_v26 = vpop.xlane.xlu0 %1549 }
 0x3ce   : > { %v1560_v32 = vsub.f32 %v1471_v4, %v1550_v26 }
 0x3d0   : > { %v3204_v33 = vpop.eup %3203  ;;  %v1564_v34 = vmul.f32 1.442695, %v1560_v32  ;;  %v3162_v35 = vpop.permute.xlu1 %3161 }
 0x3d1   : > { %v3164_v36 = vunpack.i.h.bf16 %v3162_v35  ;;  %v3163_v37 = vunpack.i.l.bf16 %v3162_v35  ;;  %v1581_v38 = vsel %vm1547_vm12, %v3204_v33, 0.0 }
 0x3d2   : > { %3205 = vpow2.f32 %v1564_v34  ;;  %1582 = vadd.xlane.f32.xlu2 %v1581_v38 }
 0x3d3   : > { %v1449_v39 = vpack.c.bf16 %v3164_v36, %v3164_v36  ;;  %v1448_v40 = vpack.c.bf16 %v3163_v37, %v3163_v37 }
 0x3d5   : > { %v1665_v41 = vunpack.c.l.b16 %v1449_v39  ;;  %v1664_v42 = vunpack.c.l.b16 %v1448_v40  ;;  %v1189_v39 = vld [vmem:[%s4417_s24] sm:$0xff]  ;;  %s4812_s24 = sld [smem:[#allocation71_spill]] }
 0x3d6   : > { %v1800_v40 = vsel %vm1547_vm12, %v1189_v39, 0.0 }
 0x3d7   : > { %v1666_v43 = vpack.c.b16 %v1665_v41, %v1664_v42 }
 0x3d8   : > { %v3206_v44 = vpop.eup %3205 }
 0x3d9   : > { %v1572_v45 = vsel %vm1547_vm12, %v3206_v44, 0.0  ;;  %1678 = vmatpush.bf16.msra.mxu2 %v1666_v43 }
 0x3da   : > { %1573 = vadd.xlane.f32.xlu1 %v1572_v45 }
 0x3df   : > { %3166 = vrot.lane.b32.xlu0 %v3160_v18, %s4002_s18 }
 0x3e2   : > { %1801 = vadd.xlane.f32.xlu1 %v1800_v40 }
 0x3ea   : > { %3171 = vrot.lane.b32.xlu2 %v3160_v18, %s4001_s0 }
 0x438   : > { %v1580_v46 = vpop.xlane.xlu2 %1579 }
 0x43e   : > { %v1577_v48 = vpop.xlane.xlu0 %1576 }
 0x445   : > { %v1583_v47 = vpop.xlane.xlu2 %1582 }
 0x446   : > { %3207 = vrcp.f32 %v1583_v47 }
 0x447   : > { %3209 = vrcp.f32 %v1580_v46  ;;  %v4007_v46 = vmov 16.0  }
 0x448   : > { %3211 = vrcp.f32 %v1577_v48 }
 0x44c   : > { %v3208_v49 = vpop.eup %3207 }
 0x44d   : > { %v1591_v50 = vmul.f32 %v3208_v49, %v3204_v33  ;;  %v3172_v51 = vpop.permute.xlu2 %3171  ;;  %v1574_v52 = vpop.xlane.xlu1 %1573  ;;  %v3177_v33 = vld [vmem:[#allocation14] ss:$0 sm:$0xff] }
 0x44e   : > { %v3174_v53 = vunpack.i.h.bf16 %v3172_v51  ;;  %v3173_v54 = vunpack.i.l.bf16 %v3172_v51  ;;  %3213 = vrcp.f32 %v1574_v52  ;;  %v3210_v56 = vpop.eup %3209 }
 0x44f   : > { %v1595_v55 = vpack.c.bf16 %v1591_v50, %v1591_v50  ;;  %v3212_v0 = vpop.eup %3211  ;;  %v1590_v2 = vmul.f32 %v3210_v56, %v3200_v25  ;;  %v2844_v25 = vld [vmem:[#allocation13 + $0x8] sm:$0xff]  ;;  %3215 = vrcp.f32 %v4007_v46  ;;  %v3182_v46 = vld [vmem:[#allocation19] ss:$0 sm:$0xff] }
 0x450   : > { %v1447_v57 = vpack.c.bf16 %v3174_v53, %v3174_v53  ;;  %v1446_v58 = vpack.c.bf16 %v3173_v54, %v3173_v54  ;;  %v1589_v11 = vmul.f32 %v3212_v0, %v3202_v31  ;;  %1725 = vmatpush.bf16.msra.mxu3 %v2844_v25 }
 0x451   : > { %2766 = vmatmul.msk.bf16.vlgmr.msra.gmra.mxu2 %vm1547_vm12, %v1595_v55  ;;  %v3167_v59 = vpop.permute.xlu0 %3166  ;;  %v1594_v10 = vpack.c.bf16 %v1590_v2, %v1590_v2 }
 0x452   : > { %v1643_v60 = vunpack.c.l.b16 %v1447_v57  ;;  %v1642_v61 = vunpack.c.l.b16 %v1446_v58  ;;  %v3169_v62 = vunpack.i.h.bf16 %v3167_v59  ;;  %v3168_v63 = vunpack.i.l.bf16 %v3167_v59 }
 0x453   : > { %v1593_v15 = vpack.c.bf16 %v1589_v11, %v1589_v11 }
 0x454   : > { %v3214_v3 = vpop.eup %3213  ;;  %v1644_v4 = vpack.c.b16 %v1643_v60, %v1642_v61  ;;  %v1445_v5 = vpack.c.bf16 %v3169_v62, %v3169_v62  ;;  %v1444_v6 = vpack.c.bf16 %v3168_v63, %v3168_v63  ;;  %1726 = vmatpush.bf16.msra.mxu3 %v2843_v27  ;;  %v3178_v61 = vld [vmem:[#allocation16] ss:$0 sm:$0xff] }
 0x455   : > { %v1588_v7 = vmul.f32 %v3214_v3, %v3206_v44  ;;  %v3216_v49 = vpop.eup %3215  ;;  %v1802_v0 = vpop.xlane.xlu1 %1801  ;;  %v3179_v3 = vld [vmem:[#allocation17] ss:$0 sm:$0xff] }
 0x456   : > { %v1621_v8 = vunpack.c.l.b16 %v1445_v5  ;;  %v1620_v9 = vunpack.c.l.b16 %v1444_v6  ;;  %1656 = vmatpush.bf16.msra.mxu1 %v1644_v4  ;;  %v1804_v51 = vmul.f32 16.0, %v3216_v49  ;;  %vm1808_vm15 = vweird.f32 %v3216_v49 }
 0x457   : > { %v1592_v13 = vpack.c.bf16 %v1588_v7, %v1588_v7 }
 0x458   : > { %v1622_v14 = vpack.c.b16 %v1621_v8, %v1620_v9  ;;  %v1805_v52 = vsub.f32 1.0, %v1804_v51 }
 0x459   : > { %2763 = vmatmul.msk.bf16.vlgmr.msrb.gmra.mxu3 %vm1547_vm12, %v1592_v13  ;;  %2765 = vmatmul.msk.bf16.vlgmr.msra.gmra.mxu1 %vm1547_vm12, %v1594_v10 }
 0x45a   : > { %1634 = vmatpush.bf16.msra.mxu0 %v1622_v14  ;;  %v1806_v56 = vmul.f32 %v3216_v49, %v1805_v52 }
 0x45c   : > { %v1807_v59 = vadd.f32 %v3216_v49, %v1806_v56 }
 0x45d   : > { %2764 = vmatmul.msk.bf16.vlgmr.msra.gmra.mxu0 %vm1547_vm12, %v1593_v15  ;;  %v2847_v15 = vld [vmem:[#allocation26] sm:$0xff] }
 0x45e   : > { %v1809_v63 = vsel %vm1808_vm15, %v3216_v49, %v1807_v59  ;;  %1896 = vmatpush.bf16.msrb.mxu1 %v2847_v15  ;;  %v3183_v49 = vld [vmem:[#allocation20] ss:$0 sm:$0xff] }
 0x45f   : > { %v1810_v5 = vmul.f32 %v1809_v63, %v1802_v0 }
 0x461   : > { %v1811_v7 = vsub.f32 %v1189_v39, %v1810_v5 }
 0x463   : > { %v1812_v10 = vmul.f32 %v1811_v7, %v1811_v7 }
 0x465   : > { %v1813_v11 = vsel %vm1547_vm12, %v1812_v10, 0.0 }
 0x4d4   : > { %v1680_v17 = vpop.f32.mrf.mxu2 }
 0x4d6   : > { %v1658_v18 = vpop.f32.mrf.mxu1 }
 0x4d7   : > { %1689 = vrot.lane.b32.xlu2 %v1658_v18, %s4004_s20 }
 0x4da   : > { %v1636_v19 = vpop.f32.mrf.mxu0 }
 0x4db   : > { %1685 = vrot.lane.b32.xlu0 %v1636_v19, %s4005_s19 }
 0x4dc   : > { %v1614_v20 = vpop.f32.mrf.mxu3  ;;  %v1682_v21 = vpop.f32.mrf.mxu2 }
 0x4de   : > { %v1660_v22 = vpop.f32.mrf.mxu1 }
 0x4e2   : > { %v1638_v23 = vpop.f32.mrf.mxu0 }
 0x4e3   : > { %1693 = vrot.lane.b32.xlu0 %v1680_v17, %s4006_s13  ;;  %v2848_v17 = vld [vmem:[#allocation28] sm:$0xff] }
 0x4e4   : > { %v1616_v24 = vpop.f32.mrf.mxu3  ;;  %1915 = vmatpush.bf16.msrb.mxu2 %v2848_v17 }
 0x531   : > { %v1690_v30 = vpop.permute.xlu2 %1689 }
 0x54d   : > { %v1686_v28 = vpop.permute.xlu0 %1685 }
 0x54e   : > { %v1696_v29 = vsel %vm1455_vm11, %v1614_v20, %v1686_v28 }
 0x54f   : > { %v1697_v16 = vsel %vm1547_vm12, %v1696_v29, %v1690_v30  ;;  %v3180_v30 = vld [vmem:[#allocation22] ss:$0 sm:$0xff] }
 0x555   : > { %v1694_v31 = vpop.permute.xlu0 %1693 }
 0x556   : > { %v1699_v26 = vsel %vm1698_vm13, %v1697_v16, %v1694_v31 }
 0x557   : > { %v1700_v32 = vpack.c.bf16 %v1699_v26, %v1699_v26  ;;  %v3181_v26 = vld [vmem:[#allocation23] ss:$0 sm:$0xff] }
 0x559   : > { %2775 = vmatmul.msk.bf16.vlgmr.msra.gmra.mxu3 %vm1192_vm0, %v1700_v32 }
 0x5dc   : > { %v1728_v34 = vpop.f32.mrf.mxu3 }
 0x5dd   : > { %v1729_v35 = vadd.f32 %v3177_v33, %v1728_v34 }
 0x5df   : > { %v1732_v36 = vadd.f32 %v1729_v35, %v4462_v1  ;;  %v2846_v35 = vld [vmem:[#allocation25 + $0x8] sm:$0xff] }
 0x5e0   : > { %1872 = vmatpush.bf16.msrb.mxu0 %v2846_v35 }
 0x5e1   : > { %v1735_v37 = vsel %vm1192_vm0, %v1732_v36, 0.0 }
 0x5e2   : > { %1736 = vadd.xlane.f32.xlu2 %v1735_v37 }
 0x5e4   : > { %v1730_v38 = vpop.f32.mrf.mxu3 }
 0x655   : > { %v1737_v41 = vpop.xlane.xlu2 %1736 }
 0x656   : > { %v1738_v42 = vmul.f32 %v1737_v41, %v4469_v12 }
 0x658   : > { %v1739_v43 = vsub.f32 %v1732_v36, %v1738_v42  ;;  %v2845_v36 = vld [vmem:[#allocation25] sm:$0xff] }
 0x659   : > { %1873 = vmatpush.bf16.msrb.mxu0 %v2845_v36 }
 0x65a   : > { %v1740_v44 = vmul.f32 %v1739_v43, %v1739_v43 }
 0x65c   : > { %v1741_v45 = vsel %vm1192_vm0, %v1740_v44, 0.0 }
 0x65d   : > { %1742 = vadd.xlane.f32.xlu0 %v1741_v45 }
 0x6d0   : > { %v1743_v47 = vpop.xlane.xlu0 %1742 }
 0x6d1   : > { %v1744_v48 = vmul.f32 %v1743_v47, %v4469_v12 }
 0x6d3   : > { %v1745_v50 = vadd.f32 1e-05, %v1744_v48 }
 0x6d5   : > { %3217 = vrsqrt.f32 %v1745_v50  ;;  %vm1752_vm1 = vweird.f32 %v1745_v50 }
 0x6db   : > { %v3218_v53 = vpop.eup %3217 }
 0x6dc   : > { %v1747_v54 = vmul.f32 %v3218_v53, %v1745_v50  ;;  %vm1753_vm14 = vweird.f32 %v3218_v53 }
 0x6dd   : > { %vm1754_vm2 = vmor %vm1752_vm1, %vm1753_vm14 }
 0x6de   : > { %v1748_v55 = vmul.f32 %v3218_v53, %v1747_v54 }
 0x6e0   : > { %v1749_v57 = vmul.f32 0.5, %v1748_v55 }
 0x6e2   : > { %v1750_v58 = vsub.f32 1.5, %v1749_v57 }
 0x6e4   : > { %v1751_v60 = vmul.f32 %v3218_v53, %v1750_v58 }
 0x6e6   : > { %v1755_v62 = vsel %vm1754_vm2, %v3218_v53, %v1751_v60 }
 0x6e7   : > { %v1756_v2 = vmul.f32 %v1755_v62, %v1739_v43 }
 0x6e9   : > { %v1760_v4 = vmul.f32 %v3178_v61, %v1756_v2 }
 0x6eb   : > { %v1764_v6 = vadd.f32 %v3179_v3, %v1760_v4 }
 0x6ed   : > { %v4546_v8 = vadd.f32 %v1764_v6, %v4462_v1 }
 0x6ef   : > { %v1768_v9 = vsel %vm1192_vm0, %v4546_v8, 0.0 }
 0x6f0   : > { %1769 = vadd.xlane.f32.xlu1 %v1768_v9 }
 0x6f8   : > { %1814 = vadd.xlane.f32.xlu1 %v1813_v11 }
 0x763   : > { %v1770_v13 = vpop.xlane.xlu1 %1769 }
 0x764   : > { %v1771_v14 = vmul.f32 %v1770_v13, %v4469_v12 }
 0x766   : > { %v1772_v18 = vsub.f32 %v4546_v8, %v1771_v14 }
 0x768   : > { %v1773_v19 = vmul.f32 %v1772_v18, %v1772_v18 }
 0x76a   : > { %v1774_v1 = vsel %vm1192_vm0, %v1773_v19, 0.0 }
 0x76b   : > { %1775 = vadd.xlane.f32.xlu2 %v1774_v1  ;;  %v1815_v20 = vpop.xlane.xlu1 %1814 }
 0x76c   : > { %v1816_v21 = vmul.f32 %v1815_v20, %v1809_v63 }
 0x76e   : > { %v1817_v22 = vadd.f32 1e-05, %v1816_v21 }
 0x770   : > { %3219 = vrsqrt.f32 %v1817_v22  ;;  %vm1824_vm3 = vweird.f32 %v1817_v22 }
 0x776   : > { %v3220_v23 = vpop.eup %3219 }
 0x777   : > { %v1819_v24 = vmul.f32 %v3220_v23, %v1817_v22  ;;  %vm1825_vm4 = vweird.f32 %v3220_v23 }
 0x778   : > { %vm1826_vm5 = vmor %vm1824_vm3, %vm1825_vm4 }
 0x779   : > { %v1820_v25 = vmul.f32 %v3220_v23, %v1819_v24 }
 0x77b   : > { %v1821_v27 = vmul.f32 0.5, %v1820_v25 }
 0x77d   : > { %v1822_v28 = vsub.f32 1.5, %v1821_v27 }
 0x77f   : > { %v1823_v29 = vmul.f32 %v3220_v23, %v1822_v28 }
 0x781   : > { %v1827_v31 = vsel %vm1826_vm5, %v3220_v23, %v1823_v29 }
 0x782   : > { %v1828_v16 = vmul.f32 %v1827_v31, %v1811_v7 }
 0x784   : > { %v1832_v32 = vmul.f32 %v3180_v30, %v1828_v16 }
 0x786   : > { %v1836_v33 = vadd.f32 %v3181_v26, %v1832_v32 }
 0x788   : > { %v1879_v34 = vpack.c.bf16 %v1836_v33, %v1836_v33 }
 0x78a   : > { %2789 = vmatmul.msk.bf16.vlgmr.msrb.gmra.mxu1 %vm1547_vm12, %v1879_v34  ;;  %2794 = vmatmul.msk.bf16.vlgmr.msrb.gmra.mxu2 %vm1547_vm12, %v1879_v34 }
 0x7de   : > { %v1776_v37 = vpop.xlane.xlu2 %1775 }
 0x7df   : > { %v1777_v38 = vmul.f32 %v1776_v37, %v4469_v12 }
 0x7e1   : > { %v1778_v39 = vadd.f32 1e-05, %v1777_v38 }
 0x7e3   : > { %3221 = vrsqrt.f32 %v1778_v39  ;;  %vm1785_vm7 = vweird.f32 %v1778_v39 }
 0x7e9   : > { %v3222_v40 = vpop.eup %3221 }
 0x7ea   : > { %v1780_v41 = vmul.f32 %v3222_v40, %v1778_v39  ;;  %vm1786_vm6 = vweird.f32 %v3222_v40 }
 0x7eb   : > { %vm1787_vm8 = vmor %vm1785_vm7, %vm1786_vm6 }
 0x7ec   : > { %v1781_v42 = vmul.f32 %v3222_v40, %v1780_v41 }
 0x7ee   : > { %v1782_v43 = vmul.f32 0.5, %v1781_v42 }
 0x7f0   : > { %v1783_v44 = vsub.f32 1.5, %v1782_v43 }
 0x7f2   : > { %v1784_v45 = vmul.f32 %v3222_v40, %v1783_v44 }
 0x7f4   : > { %v1788_v47 = vsel %vm1787_vm8, %v3222_v40, %v1784_v45 }
 0x7f5   : > { %v1789_v48 = vmul.f32 %v1788_v47, %v1772_v18 }
 0x7f7   : > { %v1793_v50 = vmul.f32 %v3182_v46, %v1789_v48 }
 0x7f9   : > { %v1797_v51 = vadd.f32 %v3183_v49, %v1793_v50 }
 0x7fb   : > { %v1850_v52 = vpack.c.bf16 %v1797_v51, %v1797_v51 }
 0x7fd   : > { %2784 = vmatmul.msk.bf16.vlgmr.msrb.gmra.mxu0 %vm1192_vm0, %v1850_v52 }
 0x807   : > { %v1898_v53 = vpop.f32.mrf.mxu1 }
 0x808   : > { %1936 = vrot.lane.b32.xlu2 %v1898_v53, %s4002_s18  ;;  %1942 = vrot.lane.b32.xlu0 %v1898_v53, %s4003_s12  ;;  %v1945_v54 = vpack.c.bf16 %v1898_v53, %v1898_v53 }
 0x80a   : > { %v1967_v55 = vsel %vm1455_vm11, %v1945_v54, 0 }
 0x80b   : > { %1976 = vmatpush.bf16.xpose.msrb.mxu3 %v1967_v55 }
 0x80d   : > { %v4561_v56 = vpop.f32.mrf.mxu2 }
 0x80e   : > { %v1959_v57 = vpack.c.bf16 %v4561_v56, %v4561_v56 }
 0x80f   : > { %v1900_v58 = vpop.f32.mrf.mxu1 }
 0x810   : > { %1939 = vrot.lane.b32.xlu0 %v1898_v53, %s4001_s0  ;;  %v2092_v59 = vsel %vm2090_vm9, %v1959_v57, 0 }
 0x813   : > { %2101 = vmatpush.bf16.msra.mxu3 %v2092_v59 }
 0x815   : > { %v1919_v60 = vpop.f32.mrf.mxu2 }
 0x862   : > { %v1937_v61 = vpop.permute.xlu2 %1936 }
 0x863   : > { %v1946_v62 = vpack.c.bf16 %v1937_v61, %v1937_v61 }
 0x865   : > { %v1986_v63 = vsel %vm1455_vm11, %v1946_v62, 0 }
 0x866   : > { %1995 = vmatpush.bf16.xpose.msra.mxu0 %v1986_v63 }
 0x87a   : > { %v1875_v0 = vpop.f32.mrf.mxu0  ;;  %v1943_v2 = vpop.permute.xlu0 %1942 }
 0x87b   : > { %v1931_v3 = vpack.c.bf16 %v1875_v0, %v1875_v0  ;;  %v1948_v4 = vpack.c.bf16 %v1943_v2, %v1943_v2  ;;  %1928 = vrot.lane.b32.xlu1 %v1875_v0, %s4003_s12  ;;  %1925 = vrot.lane.b32.xlu0 %v1875_v0, %s4001_s0 }
 0x87d   : > { %v2024_v5 = vsel %vm1455_vm11, %v1948_v4, 0  ;;  %2795 = vmatmul.msk.bf16.vlgmr.msrb.gmra.mxu3 %vm1455_vm11, %v1931_v3 }
 0x87e   : > { %2033 = vmatpush.bf16.xpose.msra.mxu2 %v2024_v5 }
 0x882   : > { %v1877_v6 = vpop.f32.mrf.mxu0  ;;  %v1940_v7 = vpop.permute.xlu0 %1939 }
 0x883   : > { %v1947_v9 = vpack.c.bf16 %v1940_v7, %v1940_v7  ;;  %1922 = vrot.lane.b32.xlu1 %v1875_v0, %s4002_s18 }
 0x885   : > { %v2005_v10 = vsel %vm1455_vm11, %v1947_v9, 0 }
 0x886   : > { %2014 = vmatpush.bf16.xpose.msra.mxu1 %v2005_v10 }
 0x8ed   : > { %v1929_v11 = vpop.permute.xlu1 %1928  ;;  %v1926_v13 = vpop.permute.xlu0 %1925 }
 0x8ee   : > { %v1934_v14 = vpack.c.bf16 %v1929_v11, %v1929_v11  ;;  %v1933_v15 = vpack.c.bf16 %v1926_v13, %v1926_v13 }
 0x8f0   : > { %2797 = vmatmul.msk.bf16.vlgmr.msra.gmra.mxu1 %vm1455_vm11, %v1933_v15  ;;  %2798 = vmatmul.msk.bf16.vlgmr.msra.gmra.mxu2 %vm1455_vm11, %v1934_v14 }
 0x8f5   : > { %v1923_v17 = vpop.permute.xlu1 %1922 }
 0x8f6   : > { %v1932_v18 = vpack.c.bf16 %v1923_v17, %v1923_v17 }
 0x8f8   : > { %2796 = vmatmul.msk.bf16.vlgmr.msra.gmra.mxu0 %vm1455_vm11, %v1932_v18 }
 0x900   : > { %v1978_v19 = vpop.f32.mrf.mxu3 }
 0x901   : > { %v2039_v29 = vsel %vm1455_vm11, %v1978_v19, -inf }
 0x908   : > { %v1980_v1 = vpop.f32.mrf.mxu3 }
 0x96d   : > { %v2016_v20 = vpop.f32.mrf.mxu1 }
 0x96e   : > { %v2045_v21 = vsel %vm1455_vm11, %v2016_v20, -inf }
 0x96f   : > { %2046 = vmax.xlane.f32.xlu0 %v2045_v21  ;;  %v2850_v21 = vld [vmem:[%s4811_s16 + $0x8] sm:$0xff] }
 0x970   : > { %2204 = vmatpush.bf16.msrb.mxu3 %v2850_v21 }
 0x973   : > { %v2035_v22 = vpop.f32.mrf.mxu2 }
 0x974   : > { %v2048_v23 = vsel %vm1455_vm11, %v2035_v22, -inf }
 0x975   : > { %v1997_v24 = vpop.f32.mrf.mxu0  ;;  %2049 = vmax.xlane.f32.xlu2 %v2048_v23  ;;  %v2018_v25 = vpop.f32.mrf.mxu1 }
 0x976   : > { %v2042_v27 = vsel %vm1455_vm11, %v1997_v24, -inf }
 0x977   : > { %2043 = vmax.xlane.f32.xlu1 %v2042_v27 }
 0x97b   : > { %v2037_v28 = vpop.f32.mrf.mxu2 }
 0x97d   : > { %v1999_v30 = vpop.f32.mrf.mxu0  ;;  %2040 = vmax.xlane.f32.xlu2 %v2039_v29 }
 0x9e2   : > { %v2047_v31 = vpop.xlane.xlu0 %2046 }
 0x9e3   : > { %v2053_v16 = vsub.f32 %v2016_v20, %v2047_v31  ;;  %v3184_v31 = vld [vmem:[%s4812_s24] ss:$0 sm:$0xff]  ;;  %s2832_s24 = sshll.u32 %s4818_s1, 1 }
 0x9e4   : > { %s2408_s9 = sadd.s32 %s4809_s26, %s2832_s24  ;;  %s2398_s26 = scalar_lea.sflag [#allocation4], %s1180_s4 }
 0x9e5   : > { %v2059_v26 = vmul.f32 1.442695, %v2053_v16  ;;  %s2833_s22 = sshll.u32 %s2408_s9, 3 }
 0x9e7   : > { %3223 = vpow2.f32 %v2059_v26 }
 0x9e8   : > { %v2050_v32 = vpop.xlane.xlu2 %2049 }
 0x9e9   : > { %v2054_v33 = vsub.f32 %v2035_v22, %v2050_v32  ;;  %v2849_v22 = vld [vmem:[%s4811_s16] sm:$0xff] }
 0x9ea   : > { %v2044_v34 = vpop.xlane.xlu1 %2043  ;;  %2205 = vmatpush.bf16.msrb.mxu3 %v2849_v22 }
 0x9eb   : > { %v2061_v35 = vmul.f32 1.442695, %v2054_v33  ;;  %v2052_v36 = vsub.f32 %v1997_v24, %v2044_v34 }
 0x9ed   : > { %v3224_v37 = vpop.eup %3223  ;;  %3225 = vpow2.f32 %v2061_v35  ;;  %v2057_v38 = vmul.f32 1.442695, %v2052_v36 }
 0x9ee   : > { %v2069_v39 = vsel %vm1455_vm11, %v3224_v37, 0.0 }
 0x9ef   : > { %3227 = vpow2.f32 %v2057_v38  ;;  %2070 = vadd.xlane.f32.xlu2 %v2069_v39 }
 0x9f0   : > { %v2041_v44 = vpop.xlane.xlu2 %2040 }
 0x9f1   : > { %v2051_v45 = vsub.f32 %v1978_v19, %v2041_v44 }
 0x9f3   : > { %v3226_v40 = vpop.eup %3225  ;;  %v2055_v46 = vmul.f32 1.442695, %v2051_v45 }
 0x9f4   : > { %v2072_v41 = vsel %vm1455_vm11, %v3226_v40, 0.0 }
 0x9f5   : > { %v3228_v42 = vpop.eup %3227  ;;  %2073 = vadd.xlane.f32.xlu1 %v2072_v41  ;;  %3229 = vpow2.f32 %v2055_v46 }
 0x9f6   : > { %v2066_v43 = vsel %vm1455_vm11, %v3228_v42, 0.0 }
 0x9f7   : > { %2067 = vadd.xlane.f32.xlu0 %v2066_v43 }
 0x9fb   : > { %v3230_v47 = vpop.eup %3229 }
 0x9fc   : > { %v2063_v48 = vsel %vm1455_vm11, %v3230_v47, 0.0 }
 0xa07   : > { %1953 = vrot.lane.b32.xlu2 %v4561_v56, %s4001_s0  ;;  %s4814_s0 = sld [smem:[#allocation73_spill]] }
 0xa0b   : > { %1950 = vrot.lane.b32.xlu0 %v4561_v56, %s4002_s18  ;;  %s4820_s18 = sld [smem:[#allocation79_spill]] }
 0xa0e   : > { %1956 = vrot.lane.b32.xlu1 %v4561_v56, %s4003_s12 }
 0xa35   : > { %2064 = vadd.xlane.f32.xlu0 %v2063_v48 }
 0xa62   : > { %v2071_v49 = vpop.xlane.xlu2 %2070 }
 0xa63   : > { %3231 = vrcp.f32 %v2071_v49  ;;  %v3185_v49 = vld [vmem:[%s4813_s27] ss:$0 sm:$0xff]  ;;  %s2730_s27 = sshll.u32 %s1180_s4, 3 }
 0xa68   : > { %v2074_v57 = vpop.xlane.xlu1 %2073 }
 0xa69   : > { %v3232_v50 = vpop.eup %3231 }
 0xa6a   : > { %v1954_v51 = vpop.permute.xlu2 %1953  ;;  %v2081_v52 = vmul.f32 %v3232_v50, %v3224_v37  ;;  %v2068_v56 = vpop.xlane.xlu0 %2067 }
 0xa6b   : > { %v1961_v53 = vpack.c.bf16 %v1954_v51, %v1954_v51  ;;  %3233 = vrcp.f32 %v2068_v56 }
 0xa6c   : > { %v2085_v55 = vpack.c.bf16 %v2081_v52, %v2081_v52  ;;  %3235 = vrcp.f32 %v2074_v57  ;;  %v3186_v52 = vld [vmem:[%s4814_s0] ss:$0 sm:$0xff] }
 0xa6d   : > { %v2130_v54 = vsel %vm2090_vm9, %v1961_v53, 0 }
 0xa6e   : > { %2139 = vmatpush.bf16.msrb.mxu1 %v2130_v54 }
 0xa71   : > { %2801 = vmatmul.msk.bf16.vlgmr.msrb.gmra.mxu1 %vm1455_vm11, %v2085_v55  ;;  %v3234_v58 = vpop.eup %3233 }
 0xa72   : > { %v3236_v60 = vpop.eup %3235  ;;  %v2080_v61 = vmul.f32 %v3234_v58, %v3228_v42 }
 0xa73   : > { %v2082_v2 = vmul.f32 %v3236_v60, %v3226_v40 }
 0xa74   : > { %v2084_v4 = vpack.c.bf16 %v2080_v61, %v2080_v61 }
 0xa75   : > { %v2086_v6 = vpack.c.bf16 %v2082_v2, %v2082_v2 }
 0xa7d   : > { %v1951_v59 = vpop.permute.xlu0 %1950 }
 0xa7e   : > { %v1960_v62 = vpack.c.bf16 %v1951_v59, %v1951_v59 }
 0xa80   : > { %v2111_v63 = vsel %vm2090_vm9, %v1960_v62, 0  ;;  %v1957_v0 = vpop.permute.xlu1 %1956  ;;  %v2852_v62 = vld [vmem:[#allocation29 + $0x8] sm:$0xff] }
 0xa81   : > { %v1962_v3 = vpack.c.bf16 %v1957_v0, %v1957_v0  ;;  %2120 = vmatpush.bf16.msrb.mxu0 %v2111_v63  ;;  %v2851_v63 = vld [vmem:[#allocation29] sm:$0xff] }
 0xa83   : > { %v2149_v5 = vsel %vm2090_vm9, %v1962_v3, 0 }
 0xa84   : > { %2800 = vmatmul.msk.bf16.vlgmr.msrb.gmra.mxu0 %vm1455_vm11, %v2084_v4  ;;  %2158 = vmatpush.bf16.msrb.mxu2 %v2149_v5 }
 0xa85   : > { %2307 = vmatpush.bf16.msra.mxu0 %v2852_v62 }
 0xa87   : > { %2802 = vmatmul.msk.bf16.vlgmr.msrb.gmra.mxu2 %vm1455_vm11, %v2086_v6 }
 0xa89   : > { %2308 = vmatpush.bf16.msra.mxu0 %v2851_v63  ;;  %v3190_v63 = vld [vmem:[%s4820_s18] ss:$0 sm:$0xff] }
 0xaa8   : > { %v2065_v7 = vpop.xlane.xlu0 %2064 }
 0xaa9   : > { %3237 = vrcp.f32 %v2065_v7 }
 0xaaf   : > { %v3238_v9 = vpop.eup %3237 }
 0xab0   : > { %v2079_v10 = vmul.f32 %v3238_v9, %v3230_v47 }
 0xab2   : > { %v2083_v11 = vpack.c.bf16 %v2079_v10, %v2079_v10 }
 0xab4   : > { %2799 = vmatmul.msk.bf16.vlgmr.msra.gmra.mxu3 %vm1455_vm11, %v2083_v11 }
 0xaee   : > { %v2141_v13 = vpop.f32.mrf.mxu1 }
 0xaef   : > { %2169 = vrot.lane.b32.xlu2 %v2141_v13, %s4004_s20  ;;  %s4815_s20 = sld [smem:[#allocation74_spill]] }
 0xaf5   : > { %v3187_v10 = vld [vmem:[%s4815_s20] ss:$0 sm:$0xff] }
 0xaf6   : > { %v2143_v14 = vpop.f32.mrf.mxu1 }
 0xb01   : > { %v2122_v15 = vpop.f32.mrf.mxu0 }
 0xb02   : > { %2165 = vrot.lane.b32.xlu1 %v2122_v15, %s4005_s19  ;;  %s4821_s19 = sld [smem:[#allocation80_spill]] }
 0xb08   : > { %s3835_s9 = scalar_lea.hbm %s4821_s19, 32 }
 0xb09   : > { %v2124_v17 = vpop.f32.mrf.mxu0 }
 0xb0a   : > { %v2160_v18 = vpop.f32.mrf.mxu2 }
 0xb0b   : > { %2173 = vrot.lane.b32.xlu1 %v2160_v18, %s4006_s13  ;;  %v3189_v18 = vld [vmem:[%s4817_s30] ss:$0 sm:$0xff]  ;;  %s2410_s13 = scalar_lea.hbm %s4821_s19, %s2833_s22 }
 0xb0c   : > { %s2414_s28 = sshll.u32 %s2410_s13, 4  ;;  %s2415_s28 = int_to_ptr.hbm [resolvable:$true] %s2414_s28 }
 0xb0d   : > { %s3829_s30 = sshra.s32 %s2415_s28, 4  ;;  %s3830_s30 = int_to_ptr.hbm [resolvable:$true] %s3829_s30 }
 0xb0e   : > { %s3831_s1 = scalar_lea.hbm %s3830_s30, 8  ;;  %p3836_p12 = scmp.lt.s32.totalorder %s3830_s30, %s4821_s19 }
 0xb0f   : > { %p3832_p1 = scmp.ne.s32.totalorder %s3830_s30, %s3831_s1  ;;  %p3837_p13 = scmp.lt.s32.totalorder %s3835_s9, %s3831_s1 }
 0xb11   : > { %p3833_p3 = pnand %p3832_p1, %p4372_p6  ;;  %p3838_p0 = por %p3837_p13, %p3836_p12 }
 0xb12   : > { %v2162_v19 = vpop.f32.mrf.mxu2 }
 0xb13   : > { %p3834_p9 = pneg %p3833_p3 }
 0xb15   : > { %p3839_p2 = pnand %p3838_p0, %p3834_p9 }
 0xb37   : > { %v2103_v1 = vpop.f32.mrf.mxu3 }
 0xb3f   : > { %v2105_v20 = vpop.f32.mrf.mxu3 }
 0xb49   : > { %v2170_v25 = vpop.permute.xlu2 %2169 }
 0xb74   : > { %v2166_v23 = vpop.permute.xlu1 %2165 }
 0xb75   : > { %v2176_v24 = vsel %vm1455_vm11, %v2103_v1, %v2166_v23 }
 0xb76   : > { %v2177_v28 = vsel %vm1547_vm12, %v2176_v24, %v2170_v25 }
 0xb7d   : > { %v2174_v27 = vpop.permute.xlu1 %2173 }
 0xb7e   : > { %v2178_v29 = vsel %vm1698_vm13, %v2177_v28, %v2174_v27 }
 0xb7f   : > { %v2179_v30 = vpack.c.bf16 %v2178_v29, %v2178_v29 }
 0xb81   : > { %2811 = vmatmul.msk.bf16.vlgmr.msrb.gmra.mxu3 %vm1192_vm0, %v2179_v30 }
 0xc04   : > { %v2207_v16 = vpop.f32.mrf.mxu3 }
 0xc05   : > { %v2208_v26 = vadd.f32 %v3184_v31, %v2207_v16 }
 0xc07   : > { %v2211_v32 = vadd.f32 %v2208_v26, %v4546_v8  ;;  %v2854_v26 = vld [vmem:[#allocation31 + $0x8] sm:$0xff] }
 0xc08   : > { %2388 = vmatpush.bf16.msra.mxu1 %v2854_v26 }
 0xc09   : > { %v2214_v33 = vsel %vm1192_vm0, %v2211_v32, 0.0 }
 0xc0a   : > { %2215 = vadd.xlane.f32.xlu2 %v2214_v33 }
 0xc0c   : > { %v2209_v34 = vpop.f32.mrf.mxu3 }
 0xc7d   : > { %v2216_v35 = vpop.xlane.xlu2 %2215 }
 0xc7e   : > { %v2217_v36 = vmul.f32 %v2216_v35, %v4469_v12  ;;  %v2853_v35 = vld [vmem:[#allocation31] sm:$0xff] }
 0xc7f   : > { %2389 = vmatpush.bf16.msra.mxu1 %v2853_v35 }
 0xc80   : > { %v2218_v37 = vsub.f32 %v2211_v32, %v2217_v36 }
 0xc82   : > { %v2219_v38 = vmul.f32 %v2218_v37, %v2218_v37 }
 0xc84   : > { %v2220_v39 = vsel %vm1192_vm0, %v2219_v38, 0.0 }
 0xc85   : > { %2221 = vadd.xlane.f32.xlu1 %v2220_v39 }
 0xcf8   : > { %v2222_v40 = vpop.xlane.xlu1 %2221 }
 0xcf9   : > { %v2223_v41 = vmul.f32 %v2222_v40, %v4469_v12 }
 0xcfb   : > { %v2224_v42 = vadd.f32 1e-05, %v2223_v41 }
 0xcfd   : > { %3239 = vrsqrt.f32 %v2224_v42  ;;  %vm2231_vm11 = vweird.f32 %v2224_v42 }
 0xd03   : > { %v3240_v43 = vpop.eup %3239 }
 0xd04   : > { %v2226_v44 = vmul.f32 %v3240_v43, %v2224_v42  ;;  %vm2232_vm10 = vweird.f32 %v3240_v43 }
 0xd05   : > { %vm2233_vm12 = vmor %vm2231_vm11, %vm2232_vm10 }
 0xd06   : > { %v2227_v45 = vmul.f32 %v3240_v43, %v2226_v44 }
 0xd08   : > { %v2228_v46 = vmul.f32 0.5, %v2227_v45 }
 0xd0a   : > { %v2229_v47 = vsub.f32 1.5, %v2228_v46 }
 0xd0c   : > { %v2230_v48 = vmul.f32 %v3240_v43, %v2229_v47 }
 0xd0e   : > { %v2234_v50 = vsel %vm2233_vm12, %v3240_v43, %v2230_v48 }
 0xd0f   : > { %v2235_v51 = vmul.f32 %v2234_v50, %v2218_v37 }
 0xd11   : > { %v2239_v53 = vmul.f32 %v3185_v49, %v2235_v51 }
 0xd13   : > { %v2243_v54 = vadd.f32 %v3186_v52, %v2239_v53 }
 0xd15   : > { %v4626_v55 = vadd.f32 %v2243_v54, %v4546_v8 }
 0xd17   : > { %v2247_v56 = vsel %vm1192_vm0, %v4626_v55, 0.0 }
 0xd18   : > { %2248 = vadd.xlane.f32.xlu0 %v2247_v56 }
 0xd8b   : > { %v2249_v57 = vpop.xlane.xlu0 %2248 }
 0xd8c   : > { %v2250_v58 = vmul.f32 %v2249_v57, %v4469_v12 }
 0xd8e   : > { %v2251_v59 = vsub.f32 %v4626_v55, %v2250_v58 }
 0xd90   : > { %v2252_v60 = vmul.f32 %v2251_v59, %v2251_v59 }
 0xd92   : > { %v2253_v61 = vsel %vm1192_vm0, %v2252_v60, 0.0 }
 0xd93   : > { %2254 = vadd.xlane.f32.xlu0 %v2253_v61 }
 0xe06   : > { %v2255_v0 = vpop.xlane.xlu0 %2254 }
 0xe07   : > { %v2256_v8 = vmul.f32 %v2255_v0, %v4469_v12  ;;  %v3188_v12 = vld [vmem:[%s4816_s14] ss:$0 sm:$0xff]  ;;  %s1182_s14 = scalar_lea.vmem [#allocation32], %s2730_s27 }
 0xe08   : > { %s2412_s15 = sshll.u32 %s1182_s14, 4  ;;  %s2413_s15 = int_to_ptr.vmem [resolvable:$true] %s2412_s15 }
 0xe09   : > { %v2257_v2 = vadd.f32 1e-05, %v2256_v8 }
 0xe0b   : > { %3241 = vrsqrt.f32 %v2257_v2  ;;  %vm2264_vm14 = vweird.f32 %v2257_v2 }
 0xe11   : > { %v3242_v3 = vpop.eup %3241 }
 0xe12   : > { %v2259_v4 = vmul.f32 %v3242_v3, %v2257_v2  ;;  %vm2265_vm13 = vweird.f32 %v3242_v3 }
 0xe13   : > { %vm2266_vm15 = vmor %vm2264_vm14, %vm2265_vm13 }
 0xe14   : > { %v2260_v5 = vmul.f32 %v3242_v3, %v2259_v4 }
 0xe16   : > { %v2261_v6 = vmul.f32 0.5, %v2260_v5 }
 0xe18   : > { %v2262_v7 = vsub.f32 1.5, %v2261_v6 }
 0xe1a   : > { %v2263_v9 = vmul.f32 %v3242_v3, %v2262_v7 }
 0xe1c   : > { %v2267_v11 = vsel %vm2266_vm15, %v3242_v3, %v2263_v9 }
 0xe1d   : > { %v2268_v13 = vmul.f32 %v2267_v11, %v2251_v59 }
 0xe1f   : > { %v2272_v14 = vmul.f32 %v3187_v10, %v2268_v13 }
 0xe21   : > { %v2276_v15 = vadd.f32 %v3188_v12, %v2272_v14 }
 0xe23   : > { %v2277_v17 = vpack.c.bf16 %v2276_v15, %v2276_v15 }
 0xe25   : > { %2820 = vmatmul.msk.bf16.vlgmr.msra.gmra.mxu0 %vm1192_vm0, %v2277_v17 }
 0xea2   : > { %v2310_v19 = vpop.f32.mrf.mxu0 }
 0xea3   : > { %v2311_v1 = vadd.f32 %v3189_v18, %v2310_v19 }
 0xea5   : > { %v2315_v20 = vmul.f32 0.70710677, %v2311_v1  ;;  %v2314_v59 = vmul.f32 0.5, %v2311_v1 }
 0xea7   : > { %v2316_v21 = vmul.f32 %v2315_v20, %v2315_v20 }
 0xea9   : > { %v2317_v22 = vmin.f32 %v2316_v21, 16.0 }
 0xeaa   : > { %v2312_v23 = vpop.f32.mrf.mxu0 }
 0xeab   : > { %v2318_v24 = vmul.f32 2.1237322e-06, %v2317_v22  ;;  %v2329_v25 = vmul.f32 3.8918573e-05, %v2317_v22 }
 0xead   : > { %v2319_v27 = vadd.f32 0.00028619796, %v2318_v24  ;;  %v2330_v28 = vadd.f32 0.001143296, %v2329_v25 }
 0xeaf   : > { %v2320_v29 = vmul.f32 %v2319_v27, %v2317_v22  ;;  %v2331_v30 = vmul.f32 %v2330_v28, %v2317_v22 }
 0xeb1   : > { %v2332_v31 = vadd.f32 0.014752088, %v2331_v30  ;;  %v2321_v16 = vadd.f32 0.0036580483, %v2320_v29 }
 0xeb3   : > { %v2333_v32 = vmul.f32 %v2332_v31, %v2317_v22  ;;  %v2322_v34 = vmul.f32 %v2321_v16, %v2317_v22 }
 0xeb5   : > { %v2334_v33 = vadd.f32 0.112945676, %v2333_v32  ;;  %v2323_v38 = vadd.f32 0.05243302, %v2322_v34 }
 0xeb7   : > { %v2335_v36 = vmul.f32 %v2334_v33, %v2317_v22  ;;  %v2324_v41 = vmul.f32 %v2323_v38, %v2317_v22 }
 0xeb9   : > { %v2336_v37 = vadd.f32 0.4994258, %v2335_v36  ;;  %v2325_v42 = vadd.f32 0.18741608, %v2324_v41 }
 0xebb   : > { %v2337_v39 = vmul.f32 %v2336_v37, %v2317_v22  ;;  %v2326_v44 = vmul.f32 %v2325_v42, %v2317_v22 }
 0xebd   : > { %v2338_v40 = vadd.f32 1.0, %v2337_v39  ;;  %v2327_v48 = vadd.f32 1.1283791, %v2326_v44 }
 0xebf   : > { %3243 = vrcp.f32 %v2338_v40  ;;  %v2350_v47 = vand.u32 2147483648, %v2338_v40  ;;  %v2348_v50 = vand.u32 2147483647, %v2338_v40  ;;  %vm2344_vm2 = vweird.f32 %v2338_v40 }
 0xec0   : > { %v2328_v53 = vmul.f32 %v2327_v48, %v2315_v20 }
 0xec1   : > { %v2351_v52 = vor.u32 1.1754944e-38, %v2350_v47  ;;  %vm2349_vm4 = vcmp.eq.f32.partialorder %v2348_v50, 8.507059e+37 }
 0xec5   : > { %v3244_v43 = vpop.eup %3243 }
 0xec6   : > { %v2340_v45 = vmul.f32 %v3244_v43, %v2338_v40  ;;  %vm2345_vm1 = vweird.f32 %v3244_v43 }
 0xec7   : > { %vm2346_vm3 = vmor %vm2344_vm2, %vm2345_vm1 }
 0xec8   : > { %v2341_v46 = vsub.f32 1.0, %v2340_v45 }
 0xeca   : > { %v2342_v49 = vmul.f32 %v3244_v43, %v2341_v46 }
 0xecc   : > { %v2343_v51 = vadd.f32 %v3244_v43, %v2342_v49 }
 0xece   : > { %v2347_v54 = vsel %vm2346_vm3, %v3244_v43, %v2343_v51 }
 0xecf   : > { %v2352_v56 = vsel %vm2349_vm4, %v2351_v52, %v2347_v54 }
 0xed0   : > { %v2353_v57 = vmul.f32 %v2352_v56, %v2328_v53 }
 0xed2   : > { %v2821_v58 = vclamps-f32 %v2353_v57, 1.0 }
 0xed4   : > { %v2356_v60 = vadd.f32 1.0, %v2821_v58 }
 0xed6   : > { %v2357_v61 = vmul.f32 %v2356_v60, %v2314_v59 }
 0xed8   : > { %v2358_v62 = vpack.c.bf16 %v2357_v61, %v2357_v61 }
 0xeda   : > { %2830 = vmatmul.msk.bf16.vlgmr.msra.gmra.mxu1 %vm1192_vm0, %v2358_v62 }
 0xf57   : > { %v2391_v0 = vpop.f32.mrf.mxu1 }
 0xf58   : > { %v2392_v8 = vadd.f32 %v3190_v63, %v2391_v0 }
 0xf5a   : > { %v2395_v2 = vadd.f32 %v2392_v8, %v4626_v55 }
 0xf5c   : > { %2396 = vst.msk [vmem:[%s1182_s14] sm:$0xff] %vm1192_vm0, %v2395_v2 }
 0xf5d   : > { %3842 = shalt.err (!%p3839_p2)
}
 0xf5e   : > { %2927 = dma.vmem_to_hbm [thread:$0]  (%p4372_p6), %s2413_s15, 128, %s2415_s28, %s2398_s26  }
 0xf5f   : > { %v2393_v55 = vpop.f32.mrf.mxu1 }
 0xf60 PF: > { %s4822_s4 = sld [smem:[#allocation45_spill]]  ;;  %p3027_p4 = scmp.ge.s32.totalorder %s3977_s2, 2 }
 0xf62   : > { %p2989_p5 = pnand %p3027_p4, %p4385_p10 }
 0xf64   : > { %p2990_p7 = pneg %p2989_p5 }
 0xf66   : > { %s2426_s10 = sand.u32 1, %s4822_s4  }
 0xf67   : > { %s2427_s0 = scalar_lea.sflag [#allocation4], %s2426_s10 }
 0xf68   : > { %3932 = dma.done.wait (%p2990_p7), %s2427_s0, 128  }
 0xf69   : > { %3934 = vsyncadd (%p2990_p7), %s2427_s0, 4294967168  ;;  %s55_s2 = sadd.s32 1, %s3977_s2   ;;  %s4823_s18 = sld [smem:[#allocation46_spill]] }
 0xf6a   : > { %p52_p8 = scmp.ge.s32.totalorder %s55_s2, 6   ;;  %s4824_s5 = sld [smem:[#allocation47_spill]] }
 0xf6b   : > { %s4825_s23 = smov %s4842_s8  ;;  %s4828_s30 = smov %s3953_s3 }
 0xf6c   : > { %s4827_s9 = smov %s4825_s23  ;;  %s4829_s3 = smov %s3957_s6 }
 0xf6d   : > { %s4830_s6 = smov %s4377_s25  ;;  %s4831_s10 = smov %s3969_s11 }
 0xf6e   : > { %s4832_s0 = smov %s3973_s29  ;;  %s4833_s11 = smov %s4836_s21 }
 0xf6f   : > { %s4826_s8 = smov %s4823_s18  ;;  %s4834_s29 = smov %s4840_s7 }
 0xf70   :  { %54 = sbr.rel (!%p52_p8) target bundleno = 49 (0x31), region = 259 }
 0xf75   :  { %2433 = vsyncpa [#allocation3], 1 }
 0xf76   :  { %2435 = vsyncpa [#allocation3 + $0x1], 1 }
 0xf77   :  { %2436 = vsyncpa [#allocation6], 1 }
 0xf78   :  { %2438 = vsyncpa [#allocation6 + $0x1], 1 }
 0xf79   :  { %2439 = vsyncpa [#allocation9], 1 }
 0xf7a   :  { %2440 = vsyncpa [#allocation12], 1 }
 0xf7b   :  { %2441 = vsyncpa [#allocation15], 1 }
 0xf7c   :  { %2442 = vsyncpa [#allocation18], 1 }
 0xf7d   :  { %2443 = vsyncpa [#allocation21], 1 }
 0xf7e   :  { %2444 = vsyncpa [#allocation24], 1 }
 0xf7f   :  { %2445 = vsyncpa [#allocation27], 1 }
 0xf80   :  { %2446 = vsyncpa [#allocation30], 1 }
 0xf81   :  { %2447 = vsyncpa [#allocation4], 1 }
 0xf82   :  { %2449 = vsyncpa [#allocation4 + $0x1], 1 }

</bundles_post_ra>
